<compile_context>
chip_gen: v5e
topology: v5e:2x2
jax: 0.10.0
libtpu: 0.0.40
codegen_flags: <defaults>
</compile_context>

<pallas_src>
import functools

import jax
import jax.numpy as jnp
from jax import lax
from jax.experimental import pallas as pl
from jax.experimental.pallas import tpu as pltpu


_VMEM = pl.BlockSpec(memory_space=pltpu.MemorySpace.VMEM)


# ----------------------------------------------------------------------------
# Fused Pallas kernel: num_layers x LSTM over the full sequence + FC head.
# ----------------------------------------------------------------------------
def _lstm1_fused_kernel(*refs, hidden_size, num_layers, seq_len, batch):
    """refs layout:
         refs[0]               : x flattened time-major (T*B, Din)
         refs[1 : 1+3L]        : per layer W_ih (Din_l,4H), W_hh (H,4H), b (1,4H)
         refs[1+3L : 1+3L+8]   : w1, b1, w2, b2, w3, b3, wf_pad, bf_pad
         refs[1+3L+8]          : out (R_pad, C_pad)   lane/sublane-dense slab
       Gate column order is (i, f, o, g).  Elementwise math / state in f32,
       matmul operands in bf16 with f32 accumulation.
    """
    H = hidden_size
    L = num_layers
    T = seq_len
    B = batch

    x_ref = refs[0]
    lstm_refs = refs[1:1 + 3 * L]
    fc_refs = refs[1 + 3 * L:1 + 3 * L + 8]
    out_ref = refs[1 + 3 * L + 8]

    slab = x_ref[...]                                  # (T*B, Din), f32, on-chip
    hn_finals = []

    for l in range(L):
        w_ih = lstm_refs[3 * l][...].astype(jnp.bfloat16)        # (Din_l, 4H)
        w_hh = lstm_refs[3 * l + 1][...].astype(jnp.bfloat16)    # (H, 4H)
        b = lstm_refs[3 * l + 2][...]                            # (1, 4H), f32

        # Input-side contribution for ALL timesteps in one MXU push (M = T*B).
        gx_all = jnp.dot(slab.astype(jnp.bfloat16), w_ih,
                         preferred_element_type=jnp.float32) + b  # (T*B, 4H) f32

        h = jnp.zeros((B, H), jnp.float32)
        c = jnp.zeros((B, H), jnp.float32)
        cur_seq = []
        for t in range(T):                    # static full unroll (T small)
            gx_t = gx_all[t * B:(t + 1) * B]  # static slice, independent of h
            # Recurrent matmul: the only thing on the serial critical path.
            gates = gx_t + jnp.dot(h.astype(jnp.bfloat16), w_hh,
                                   preferred_element_type=jnp.float32)
            # Full-vreg activations (EUP slot is otherwise idle); slice after.
            sig = jax.nn.sigmoid(gates)
            th = jnp.tanh(gates)
            i_g = sig[:, 0:H]
            f_g = sig[:, H:2 * H]
            o_g = sig[:, 2 * H:3 * H]
            g_g = th[:, 3 * H:4 * H]
            c = f_g * c + i_g * g_g
            h = o_g * jnp.tanh(c)
            cur_seq.append(h)
        hn_finals.append(h)
        slab = jnp.concatenate(cur_seq, axis=0)        # (T*B, H) for next layer

    # --- FC head (batched over all layers' final hidden states) -------------
    # Weights loaded only here -> short vreg live ranges across the recurrence.
    w1 = fc_refs[0][...].astype(jnp.bfloat16); b1 = fc_refs[1][...]
    w2 = fc_refs[2][...].astype(jnp.bfloat16); b2 = fc_refs[3][...]
    w3 = fc_refs[4][...].astype(jnp.bfloat16); b3 = fc_refs[5][...]
    wf = fc_refs[6][...].astype(jnp.bfloat16); bf = fc_refs[7][...]

    hn = jnp.concatenate(hn_finals, axis=0)            # rows of hn.view(-1, H)
    rows_pad = out_ref.shape[0] - L * B
    if rows_pad:                                       # sublane-dense store
        hn = jnp.concatenate([hn, jnp.zeros((rows_pad, H), jnp.float32)], axis=0)

    z = jnp.maximum(hn, 0.0)
    z = jnp.dot(z.astype(jnp.bfloat16), w1, preferred_element_type=jnp.float32) + b1
    z = jnp.dot(z.astype(jnp.bfloat16), w2, preferred_element_type=jnp.float32) + b2
    z = jnp.dot(z.astype(jnp.bfloat16), w3, preferred_element_type=jnp.float32) + b3
    z = jnp.maximum(z, 0.0)
    out_ref[...] = jnp.dot(z.astype(jnp.bfloat16), wf,
                           preferred_element_type=jnp.float32) + bf


# ----------------------------------------------------------------------------
# Wrapper (layout plumbing only; a single pallas_call does all the compute)
# ----------------------------------------------------------------------------
def lstm1_forward(x, params):
    """x: (B, T, input_size), batch-first like the PyTorch module."""
    B, T, _ = x.shape
    H = params["hidden_size"]
    L = len(params["lstm"])
    C = params["num_classes"]

    wf_pad, bf_pad = params["fc_head_padded"]          # lane pad done at init
    C_pad = wf_pad.shape[1]
    R_pad = ((L * B + 7) // 8) * 8                     # sublane-dense rows

    x_flat = jnp.transpose(x, (1, 0, 2)).reshape(T * B, -1).astype(jnp.float32)

    lstm_flat = [t for wb in params["lstm"] for t in wb]
    (w1, b1), (w2, b2), (w3, b3), _ = params["fc"]
    fc_flat = [w1, b1, w2, b2, w3, b3, wf_pad, bf_pad]

    n_in = 1 + len(lstm_flat) + len(fc_flat)
    out = pl.pallas_call(
        functools.partial(_lstm1_fused_kernel, hidden_size=H, num_layers=L,
                          seq_len=T, batch=B),
        out_shape=jax.ShapeDtypeStruct((R_pad, C_pad), jnp.float32),
        in_specs=[_VMEM] * n_in,
        out_specs=_VMEM,
    )(x_flat, *lstm_flat, *fc_flat)

    # Drop sublane/lane padding -> rows ordered like torch's hn.view(-1, H).
    return out[:L * B, :C]


# ----------------------------------------------------------------------------
# Deterministic parameter construction (PyTorch-style uniform init)
# ----------------------------------------------------------------------------
def make_params(key, *, num_classes, input_size, hidden_size, num_layers):
    """PyTorch-style U(-1/sqrt(fan), 1/sqrt(fan)) init.

    TPU-friendly layout (mirror these transforms when importing real torch
    weights):
      * all weights stored transposed: (fan_in, fan_out);
      * LSTM gate columns ordered (i, f, o, g) instead of torch's (i, f, g, o);
      * b_ih and b_hh pre-summed into one bias row;
      * final fc weight/bias additionally stored lane-padded to 128 classes.
    """
    H = hidden_size
    k_lstm = 1.0 / jnp.sqrt(H)

    def uni(key, shape, bound):
        return jax.random.uniform(key, shape, jnp.float32, -bound, bound)

    keys = jax.random.split(key, num_layers * 4 + 8)
    ki = iter(range(len(keys)))

    lstm_layers = []
    for layer in range(num_layers):
        din = input_size if layer == 0 else H
        w_ih = uni(keys[next(ki)], (din, 4 * H), k_lstm)
        w_hh = uni(keys[next(ki)], (H, 4 * H), k_lstm)
        b_ih = uni(keys[next(ki)], (1, 4 * H), k_lstm)
        b_hh = uni(keys[next(ki)], (1, 4 * H), k_lstm)
        lstm_layers.append((w_ih, w_hh, b_ih + b_hh))

    def linear(kw, kb, fan_in, fan_out):
        bound = 1.0 / jnp.sqrt(fan_in)
        return (uni(kw, (fan_in, fan_out), bound),
                uni(kb, (1, fan_out), bound))

    fc_1 = linear(keys[next(ki)], keys[next(ki)], H, H)
    fc_2 = linear(keys[next(ki)], keys[next(ki)], H, H)
    fc_3 = linear(keys[next(ki)], keys[next(ki)], H, H)
    fc = linear(keys[next(ki)], keys[next(ki)], H, num_classes)

    # One-time lane padding of the head (done here, not per forward call).
    C_pad = ((num_classes + 127) // 128) * 128
    wf_pad = jnp.pad(fc[0], ((0, 0), (0, C_pad - num_classes)))
    bf_pad = jnp.pad(fc[1], ((0, 0), (0, C_pad - num_classes)))

    return {"hidden_size": H, "num_classes": num_classes,
            "lstm": lstm_layers, "fc": [fc_1, fc_2, fc_3, fc],
            "fc_head_padded": (wf_pad, bf_pad)}


# ----------------------------------------------------------------------------
# Pure-JAX reference (same parametrization; for the correctness check only)
# ----------------------------------------------------------------------------
def reference_forward(x, params):
    H = params["hidden_size"]
    B = x.shape[0]
    layer_in = jnp.transpose(x, (1, 0, 2)).astype(jnp.float32)   # (T, B, D)
    hns = []
    for (w_ih, w_hh, b) in params["lstm"]:
        def step(carry, x_t):
            h, c = carry
            gates = x_t @ w_ih + h @ w_hh + b
            i = jax.nn.sigmoid(gates[:, 0:H])
            f = jax.nn.sigmoid(gates[:, H:2 * H])
            o = jax.nn.sigmoid(gates[:, 2 * H:3 * H])
            g = jnp.tanh(gates[:, 3 * H:4 * H])
            c = f * c + i * g
            h = o * jnp.tanh(c)
            return (h, c), h
        init = (jnp.zeros((B, H), jnp.float32), jnp.zeros((B, H), jnp.float32))
        (h_fin, _), seq = lax.scan(step, init, layer_in)
        hns.append(h_fin)
        layer_in = seq
    z = jnp.concatenate(hns, axis=0)                 # hn.view(-1, H)
    (w1, b1), (w2, b2), (w3, b3), (wf, bf) = params["fc"]
    z = jnp.maximum(z, 0.0)
    z = z @ w1 + b1
    z = z @ w2 + b2
    z = z @ w3 + b3
    z = jnp.maximum(z, 0.0)
    return z @ wf + bf


# ----------------------------------------------------------------------------
if __name__ == "__main__":
    # Module hyperparameters (small, consistent with the forward pass).
    num_classes = 4
    input_size = 8
    hidden_size = 32
    num_layers = 2
    seq_length = 8
    batch = 2

    root = jax.random.PRNGKey(0)
    k_params, k_x = jax.random.split(root)
    params = make_params(k_params, num_classes=num_classes,
                         input_size=input_size, hidden_size=hidden_size,
                         num_layers=num_layers)

    x = jax.random.normal(k_x, (batch, seq_length, input_size), jnp.float32)

    out = lstm1_forward(x, params)
    out = jax.block_until_ready(out)

    ref = reference_forward(x, params)
    assert out.shape == (num_layers * batch, num_classes)
    # Kernel uses bf16 matmul operands (f32 accumulation/state); the f32
    # reference therefore needs a slightly relaxed tolerance.
    assert jnp.allclose(out, ref, atol=2e-2, rtol=2e-2), (
        float(jnp.max(jnp.abs(out - ref))))

    print("KERNEL_OK")
</pallas_src>

<mosaic_0001>
module attributes {stable_mosaic.version = 11 : i64} {
  func.func @_lstm1_fused_kernel(%arg0: memref<16x8xf32, #tpu.memory_space<vmem>>, %arg1: memref<8x128xf32, #tpu.memory_space<vmem>>, %arg2: memref<32x128xf32, #tpu.memory_space<vmem>>, %arg3: memref<1x128xf32, #tpu.memory_space<vmem>>, %arg4: memref<32x128xf32, #tpu.memory_space<vmem>>, %arg5: memref<32x128xf32, #tpu.memory_space<vmem>>, %arg6: memref<1x128xf32, #tpu.memory_space<vmem>>, %arg7: memref<32x32xf32, #tpu.memory_space<vmem>>, %arg8: memref<1x32xf32, #tpu.memory_space<vmem>>, %arg9: memref<32x32xf32, #tpu.memory_space<vmem>>, %arg10: memref<1x32xf32, #tpu.memory_space<vmem>>, %arg11: memref<32x32xf32, #tpu.memory_space<vmem>>, %arg12: memref<1x32xf32, #tpu.memory_space<vmem>>, %arg13: memref<32x128xf32, #tpu.memory_space<vmem>>, %arg14: memref<1x128xf32, #tpu.memory_space<vmem>>, %arg15: memref<8x128xf32, #tpu.memory_space<vmem>>) attributes {dimension_semantics = [], scalar_prefetch = 0 : i64, scratch_operands = 0 : i64, tpu.core_type = #tpu.core_type<tc>} {
    %c0 = arith.constant 0 : index
    %c0_0 = arith.constant 0 : index
    %0 = vector.load %arg0[%c0, %c0_0] : memref<16x8xf32, #tpu.memory_space<vmem>>, vector<16x8xf32>
    %c0_1 = arith.constant 0 : index
    %c0_2 = arith.constant 0 : index
    %1 = vector.load %arg1[%c0_1, %c0_2] : memref<8x128xf32, #tpu.memory_space<vmem>>, vector<8x128xf32>
    %2 = arith.truncf %1 : vector<8x128xf32> to vector<8x128xbf16>
    %c0_3 = arith.constant 0 : index
    %c0_4 = arith.constant 0 : index
    %3 = vector.load %arg2[%c0_3, %c0_4] : memref<32x128xf32, #tpu.memory_space<vmem>>, vector<32x128xf32>
    %4 = arith.truncf %3 : vector<32x128xf32> to vector<32x128xbf16>
    %c0_5 = arith.constant 0 : index
    %c0_6 = arith.constant 0 : index
    %5 = vector.load %arg3[%c0_5, %c0_6] : memref<1x128xf32, #tpu.memory_space<vmem>>, vector<1x128xf32>
    %6 = arith.truncf %0 : vector<16x8xf32> to vector<16x8xbf16>
    %cst = arith.constant dense<0.000000e+00> : vector<16x128xf32>
    %7 = tpu.matmul %6, %2, %cst {dimension_numbers = #tpu.dot_dimension_numbers<[1], [0], [0], [1], [0, 0, 1, 1], [], []>} : vector<16x8xbf16>, vector<8x128xbf16>, vector<16x128xf32> -> vector<16x128xf32>
    %8 = vector.broadcast %5 : vector<1x128xf32> to vector<16x128xf32>
    %9 = arith.addf %7, %8 : vector<16x128xf32>
    %cst_7 = arith.constant 0.000000e+00 : f32
    %10 = vector.broadcast %cst_7 : f32 to vector<2x32xf32>
    %cst_8 = arith.constant 0.000000e+00 : f32
    %11 = vector.broadcast %cst_8 : f32 to vector<2x32xf32>
    %12 = vector.extract_strided_slice %9 {offsets = [0, 0], sizes = [2, 128], strides = [1, 1]} : vector<16x128xf32> to vector<2x128xf32>
    %13 = arith.truncf %10 : vector<2x32xf32> to vector<2x32xbf16>
    %cst_9 = arith.constant dense<0.000000e+00> : vector<2x128xf32>
    %14 = tpu.matmul %13, %4, %cst_9 {dimension_numbers = #tpu.dot_dimension_numbers<[1], [0], [0], [1], [0, 0, 1, 1], [], []>} : vector<2x32xbf16>, vector<32x128xbf16>, vector<2x128xf32> -> vector<2x128xf32>
    %15 = arith.addf %12, %14 : vector<2x128xf32>
    %16 = arith.negf %15 : vector<2x128xf32>
    %17 = math.exp %16 : vector<2x128xf32>
    %cst_10 = arith.constant 1.000000e+00 : f32
    %18 = vector.broadcast %cst_10 : f32 to vector<2x128xf32>
    %19 = arith.addf %18, %17 : vector<2x128xf32>
    %20 = arith.divf %18, %19 : vector<2x128xf32>
    %21 = math.tanh %15 : vector<2x128xf32>
    %22 = vector.extract_strided_slice %20 {offsets = [0, 0], sizes = [2, 32], strides = [1, 1]} : vector<2x128xf32> to vector<2x32xf32>
    %23 = vector.extract_strided_slice %20 {offsets = [0, 32], sizes = [2, 32], strides = [1, 1]} : vector<2x128xf32> to vector<2x32xf32>
    %24 = vector.extract_strided_slice %20 {offsets = [0, 64], sizes = [2, 32], strides = [1, 1]} : vector<2x128xf32> to vector<2x32xf32>
    %25 = vector.extract_strided_slice %21 {offsets = [0, 96], sizes = [2, 32], strides = [1, 1]} : vector<2x128xf32> to vector<2x32xf32>
    %26 = arith.mulf %23, %11 : vector<2x32xf32>
    %27 = arith.mulf %22, %25 : vector<2x32xf32>
    %28 = arith.addf %26, %27 : vector<2x32xf32>
    %29 = math.tanh %28 : vector<2x32xf32>
    %30 = arith.mulf %24, %29 : vector<2x32xf32>
    %31 = vector.extract_strided_slice %9 {offsets = [2, 0], sizes = [2, 128], strides = [1, 1]} : vector<16x128xf32> to vector<2x128xf32>
    %32 = arith.truncf %30 : vector<2x32xf32> to vector<2x32xbf16>
    %cst_11 = arith.constant dense<0.000000e+00> : vector<2x128xf32>
    %33 = tpu.matmul %32, %4, %cst_11 {dimension_numbers = #tpu.dot_dimension_numbers<[1], [0], [0], [1], [0, 0, 1, 1], [], []>} : vector<2x32xbf16>, vector<32x128xbf16>, vector<2x128xf32> -> vector<2x128xf32>
    %34 = arith.addf %31, %33 : vector<2x128xf32>
    %35 = arith.negf %34 : vector<2x128xf32>
    %36 = math.exp %35 : vector<2x128xf32>
    %cst_12 = arith.constant 1.000000e+00 : f32
    %37 = vector.broadcast %cst_12 : f32 to vector<2x128xf32>
    %38 = arith.addf %37, %36 : vector<2x128xf32>
    %39 = arith.divf %37, %38 : vector<2x128xf32>
    %40 = math.tanh %34 : vector<2x128xf32>
    %41 = vector.extract_strided_slice %39 {offsets = [0, 0], sizes = [2, 32], strides = [1, 1]} : vector<2x128xf32> to vector<2x32xf32>
    %42 = vector.extract_strided_slice %39 {offsets = [0, 32], sizes = [2, 32], strides = [1, 1]} : vector<2x128xf32> to vector<2x32xf32>
    %43 = vector.extract_strided_slice %39 {offsets = [0, 64], sizes = [2, 32], strides = [1, 1]} : vector<2x128xf32> to vector<2x32xf32>
    %44 = vector.extract_strided_slice %40 {offsets = [0, 96], sizes = [2, 32], strides = [1, 1]} : vector<2x128xf32> to vector<2x32xf32>
    %45 = arith.mulf %42, %28 : vector<2x32xf32>
    %46 = arith.mulf %41, %44 : vector<2x32xf32>
    %47 = arith.addf %45, %46 : vector<2x32xf32>
    %48 = math.tanh %47 : vector<2x32xf32>
    %49 = arith.mulf %43, %48 : vector<2x32xf32>
    %50 = vector.extract_strided_slice %9 {offsets = [4, 0], sizes = [2, 128], strides = [1, 1]} : vector<16x128xf32> to vector<2x128xf32>
    %51 = arith.truncf %49 : vector<2x32xf32> to vector<2x32xbf16>
    %cst_13 = arith.constant dense<0.000000e+00> : vector<2x128xf32>
    %52 = tpu.matmul %51, %4, %cst_13 {dimension_numbers = #tpu.dot_dimension_numbers<[1], [0], [0], [1], [0, 0, 1, 1], [], []>} : vector<2x32xbf16>, vector<32x128xbf16>, vector<2x128xf32> -> vector<2x128xf32>
    %53 = arith.addf %50, %52 : vector<2x128xf32>
    %54 = arith.negf %53 : vector<2x128xf32>
    %55 = math.exp %54 : vector<2x128xf32>
    %cst_14 = arith.constant 1.000000e+00 : f32
    %56 = vector.broadcast %cst_14 : f32 to vector<2x128xf32>
    %57 = arith.addf %56, %55 : vector<2x128xf32>
    %58 = arith.divf %56, %57 : vector<2x128xf32>
    %59 = math.tanh %53 : vector<2x128xf32>
    %60 = vector.extract_strided_slice %58 {offsets = [0, 0], sizes = [2, 32], strides = [1, 1]} : vector<2x128xf32> to vector<2x32xf32>
    %61 = vector.extract_strided_slice %58 {offsets = [0, 32], sizes = [2, 32], strides = [1, 1]} : vector<2x128xf32> to vector<2x32xf32>
    %62 = vector.extract_strided_slice %58 {offsets = [0, 64], sizes = [2, 32], strides = [1, 1]} : vector<2x128xf32> to vector<2x32xf32>
    %63 = vector.extract_strided_slice %59 {offsets = [0, 96], sizes = [2, 32], strides = [1, 1]} : vector<2x128xf32> to vector<2x32xf32>
    %64 = arith.mulf %61, %47 : vector<2x32xf32>
    %65 = arith.mulf %60, %63 : vector<2x32xf32>
    %66 = arith.addf %64, %65 : vector<2x32xf32>
    %67 = math.tanh %66 : vector<2x32xf32>
    %68 = arith.mulf %62, %67 : vector<2x32xf32>
    %69 = vector.extract_strided_slice %9 {offsets = [6, 0], sizes = [2, 128], strides = [1, 1]} : vector<16x128xf32> to vector<2x128xf32>
    %70 = arith.truncf %68 : vector<2x32xf32> to vector<2x32xbf16>
    %cst_15 = arith.constant dense<0.000000e+00> : vector<2x128xf32>
    %71 = tpu.matmul %70, %4, %cst_15 {dimension_numbers = #tpu.dot_dimension_numbers<[1], [0], [0], [1], [0, 0, 1, 1], [], []>} : vector<2x32xbf16>, vector<32x128xbf16>, vector<2x128xf32> -> vector<2x128xf32>
    %72 = arith.addf %69, %71 : vector<2x128xf32>
    %73 = arith.negf %72 : vector<2x128xf32>
    %74 = math.exp %73 : vector<2x128xf32>
    %cst_16 = arith.constant 1.000000e+00 : f32
    %75 = vector.broadcast %cst_16 : f32 to vector<2x128xf32>
    %76 = arith.addf %75, %74 : vector<2x128xf32>
    %77 = arith.divf %75, %76 : vector<2x128xf32>
    %78 = math.tanh %72 : vector<2x128xf32>
    %79 = vector.extract_strided_slice %77 {offsets = [0, 0], sizes = [2, 32], strides = [1, 1]} : vector<2x128xf32> to vector<2x32xf32>
    %80 = vector.extract_strided_slice %77 {offsets = [0, 32], sizes = [2, 32], strides = [1, 1]} : vector<2x128xf32> to vector<2x32xf32>
    %81 = vector.extract_strided_slice %77 {offsets = [0, 64], sizes = [2, 32], strides = [1, 1]} : vector<2x128xf32> to vector<2x32xf32>
    %82 = vector.extract_strided_slice %78 {offsets = [0, 96], sizes = [2, 32], strides = [1, 1]} : vector<2x128xf32> to vector<2x32xf32>
    %83 = arith.mulf %80, %66 : vector<2x32xf32>
    %84 = arith.mulf %79, %82 : vector<2x32xf32>
    %85 = arith.addf %83, %84 : vector<2x32xf32>
    %86 = math.tanh %85 : vector<2x32xf32>
    %87 = arith.mulf %81, %86 : vector<2x32xf32>
    %88 = vector.extract_strided_slice %9 {offsets = [8, 0], sizes = [2, 128], strides = [1, 1]} : vector<16x128xf32> to vector<2x128xf32>
    %89 = arith.truncf %87 : vector<2x32xf32> to vector<2x32xbf16>
    %cst_17 = arith.constant dense<0.000000e+00> : vector<2x128xf32>
    %90 = tpu.matmul %89, %4, %cst_17 {dimension_numbers = #tpu.dot_dimension_numbers<[1], [0], [0], [1], [0, 0, 1, 1], [], []>} : vector<2x32xbf16>, vector<32x128xbf16>, vector<2x128xf32> -> vector<2x128xf32>
    %91 = arith.addf %88, %90 : vector<2x128xf32>
    %92 = arith.negf %91 : vector<2x128xf32>
    %93 = math.exp %92 : vector<2x128xf32>
    %cst_18 = arith.constant 1.000000e+00 : f32
    %94 = vector.broadcast %cst_18 : f32 to vector<2x128xf32>
    %95 = arith.addf %94, %93 : vector<2x128xf32>
    %96 = arith.divf %94, %95 : vector<2x128xf32>
    %97 = math.tanh %91 : vector<2x128xf32>
    %98 = vector.extract_strided_slice %96 {offsets = [0, 0], sizes = [2, 32], strides = [1, 1]} : vector<2x128xf32> to vector<2x32xf32>
    %99 = vector.extract_strided_slice %96 {offsets = [0, 32], sizes = [2, 32], strides = [1, 1]} : vector<2x128xf32> to vector<2x32xf32>
    %100 = vector.extract_strided_slice %96 {offsets = [0, 64], sizes = [2, 32], strides = [1, 1]} : vector<2x128xf32> to vector<2x32xf32>
    %101 = vector.extract_strided_slice %97 {offsets = [0, 96], sizes = [2, 32], strides = [1, 1]} : vector<2x128xf32> to vector<2x32xf32>
    %102 = arith.mulf %99, %85 : vector<2x32xf32>
    %103 = arith.mulf %98, %101 : vector<2x32xf32>
    %104 = arith.addf %102, %103 : vector<2x32xf32>
    %105 = math.tanh %104 : vector<2x32xf32>
    %106 = arith.mulf %100, %105 : vector<2x32xf32>
    %107 = vector.extract_strided_slice %9 {offsets = [10, 0], sizes = [2, 128], strides = [1, 1]} : vector<16x128xf32> to vector<2x128xf32>
    %108 = arith.truncf %106 : vector<2x32xf32> to vector<2x32xbf16>
    %cst_19 = arith.constant dense<0.000000e+00> : vector<2x128xf32>
    %109 = tpu.matmul %108, %4, %cst_19 {dimension_numbers = #tpu.dot_dimension_numbers<[1], [0], [0], [1], [0, 0, 1, 1], [], []>} : vector<2x32xbf16>, vector<32x128xbf16>, vector<2x128xf32> -> vector<2x128xf32>
    %110 = arith.addf %107, %109 : vector<2x128xf32>
    %111 = arith.negf %110 : vector<2x128xf32>
    %112 = math.exp %111 : vector<2x128xf32>
    %cst_20 = arith.constant 1.000000e+00 : f32
    %113 = vector.broadcast %cst_20 : f32 to vector<2x128xf32>
    %114 = arith.addf %113, %112 : vector<2x128xf32>
    %115 = arith.divf %113, %114 : vector<2x128xf32>
    %116 = math.tanh %110 : vector<2x128xf32>
    %117 = vector.extract_strided_slice %115 {offsets = [0, 0], sizes = [2, 32], strides = [1, 1]} : vector<2x128xf32> to vector<2x32xf32>
    %118 = vector.extract_strided_slice %115 {offsets = [0, 32], sizes = [2, 32], strides = [1, 1]} : vector<2x128xf32> to vector<2x32xf32>
    %119 = vector.extract_strided_slice %115 {offsets = [0, 64], sizes = [2, 32], strides = [1, 1]} : vector<2x128xf32> to vector<2x32xf32>
    %120 = vector.extract_strided_slice %116 {offsets = [0, 96], sizes = [2, 32], strides = [1, 1]} : vector<2x128xf32> to vector<2x32xf32>
    %121 = arith.mulf %118, %104 : vector<2x32xf32>
    %122 = arith.mulf %117, %120 : vector<2x32xf32>
    %123 = arith.addf %121, %122 : vector<2x32xf32>
    %124 = math.tanh %123 : vector<2x32xf32>
    %125 = arith.mulf %119, %124 : vector<2x32xf32>
    %126 = vector.extract_strided_slice %9 {offsets = [12, 0], sizes = [2, 128], strides = [1, 1]} : vector<16x128xf32> to vector<2x128xf32>
    %127 = arith.truncf %125 : vector<2x32xf32> to vector<2x32xbf16>
    %cst_21 = arith.constant dense<0.000000e+00> : vector<2x128xf32>
    %128 = tpu.matmul %127, %4, %cst_21 {dimension_numbers = #tpu.dot_dimension_numbers<[1], [0], [0], [1], [0, 0, 1, 1], [], []>} : vector<2x32xbf16>, vector<32x128xbf16>, vector<2x128xf32> -> vector<2x128xf32>
    %129 = arith.addf %126, %128 : vector<2x128xf32>
    %130 = arith.negf %129 : vector<2x128xf32>
    %131 = math.exp %130 : vector<2x128xf32>
    %cst_22 = arith.constant 1.000000e+00 : f32
    %132 = vector.broadcast %cst_22 : f32 to vector<2x128xf32>
    %133 = arith.addf %132, %131 : vector<2x128xf32>
    %134 = arith.divf %132, %133 : vector<2x128xf32>
    %135 = math.tanh %129 : vector<2x128xf32>
    %136 = vector.extract_strided_slice %134 {offsets = [0, 0], sizes = [2, 32], strides = [1, 1]} : vector<2x128xf32> to vector<2x32xf32>
    %137 = vector.extract_strided_slice %134 {offsets = [0, 32], sizes = [2, 32], strides = [1, 1]} : vector<2x128xf32> to vector<2x32xf32>
    %138 = vector.extract_strided_slice %134 {offsets = [0, 64], sizes = [2, 32], strides = [1, 1]} : vector<2x128xf32> to vector<2x32xf32>
    %139 = vector.extract_strided_slice %135 {offsets = [0, 96], sizes = [2, 32], strides = [1, 1]} : vector<2x128xf32> to vector<2x32xf32>
    %140 = arith.mulf %137, %123 : vector<2x32xf32>
    %141 = arith.mulf %136, %139 : vector<2x32xf32>
    %142 = arith.addf %140, %141 : vector<2x32xf32>
    %143 = math.tanh %142 : vector<2x32xf32>
    %144 = arith.mulf %138, %143 : vector<2x32xf32>
    %145 = vector.extract_strided_slice %9 {offsets = [14, 0], sizes = [2, 128], strides = [1, 1]} : vector<16x128xf32> to vector<2x128xf32>
    %146 = arith.truncf %144 : vector<2x32xf32> to vector<2x32xbf16>
    %cst_23 = arith.constant dense<0.000000e+00> : vector<2x128xf32>
    %147 = tpu.matmul %146, %4, %cst_23 {dimension_numbers = #tpu.dot_dimension_numbers<[1], [0], [0], [1], [0, 0, 1, 1], [], []>} : vector<2x32xbf16>, vector<32x128xbf16>, vector<2x128xf32> -> vector<2x128xf32>
    %148 = arith.addf %145, %147 : vector<2x128xf32>
    %149 = arith.negf %148 : vector<2x128xf32>
    %150 = math.exp %149 : vector<2x128xf32>
    %cst_24 = arith.constant 1.000000e+00 : f32
    %151 = vector.broadcast %cst_24 : f32 to vector<2x128xf32>
    %152 = arith.addf %151, %150 : vector<2x128xf32>
    %153 = arith.divf %151, %152 : vector<2x128xf32>
    %154 = math.tanh %148 : vector<2x128xf32>
    %155 = vector.extract_strided_slice %153 {offsets = [0, 0], sizes = [2, 32], strides = [1, 1]} : vector<2x128xf32> to vector<2x32xf32>
    %156 = vector.extract_strided_slice %153 {offsets = [0, 32], sizes = [2, 32], strides = [1, 1]} : vector<2x128xf32> to vector<2x32xf32>
    %157 = vector.extract_strided_slice %153 {offsets = [0, 64], sizes = [2, 32], strides = [1, 1]} : vector<2x128xf32> to vector<2x32xf32>
    %158 = vector.extract_strided_slice %154 {offsets = [0, 96], sizes = [2, 32], strides = [1, 1]} : vector<2x128xf32> to vector<2x32xf32>
    %159 = arith.mulf %156, %142 : vector<2x32xf32>
    %160 = arith.mulf %155, %158 : vector<2x32xf32>
    %161 = arith.addf %159, %160 : vector<2x32xf32>
    %162 = math.tanh %161 : vector<2x32xf32>
    %163 = arith.mulf %157, %162 : vector<2x32xf32>
    %164 = tpu.concatenate %30, %49, %68, %87, %106, %125, %144, %163 in 0 : vector<2x32xf32>, vector<2x32xf32>, vector<2x32xf32>, vector<2x32xf32>, vector<2x32xf32>, vector<2x32xf32>, vector<2x32xf32>, vector<2x32xf32> -> vector<16x32xf32>
    %c0_25 = arith.constant 0 : index
    %c0_26 = arith.constant 0 : index
    %165 = vector.load %arg4[%c0_25, %c0_26] : memref<32x128xf32, #tpu.memory_space<vmem>>, vector<32x128xf32>
    %166 = arith.truncf %165 : vector<32x128xf32> to vector<32x128xbf16>
    %c0_27 = arith.constant 0 : index
    %c0_28 = arith.constant 0 : index
    %167 = vector.load %arg5[%c0_27, %c0_28] : memref<32x128xf32, #tpu.memory_space<vmem>>, vector<32x128xf32>
    %168 = arith.truncf %167 : vector<32x128xf32> to vector<32x128xbf16>
    %c0_29 = arith.constant 0 : index
    %c0_30 = arith.constant 0 : index
    %169 = vector.load %arg6[%c0_29, %c0_30] : memref<1x128xf32, #tpu.memory_space<vmem>>, vector<1x128xf32>
    %170 = arith.truncf %164 : vector<16x32xf32> to vector<16x32xbf16>
    %cst_31 = arith.constant dense<0.000000e+00> : vector<16x128xf32>
    %171 = tpu.matmul %170, %166, %cst_31 {dimension_numbers = #tpu.dot_dimension_numbers<[1], [0], [0], [1], [0, 0, 1, 1], [], []>} : vector<16x32xbf16>, vector<32x128xbf16>, vector<16x128xf32> -> vector<16x128xf32>
    %172 = vector.broadcast %169 : vector<1x128xf32> to vector<16x128xf32>
    %173 = arith.addf %171, %172 : vector<16x128xf32>
    %cst_32 = arith.constant 0.000000e+00 : f32
    %174 = vector.broadcast %cst_32 : f32 to vector<2x32xf32>
    %cst_33 = arith.constant 0.000000e+00 : f32
    %175 = vector.broadcast %cst_33 : f32 to vector<2x32xf32>
    %176 = vector.extract_strided_slice %173 {offsets = [0, 0], sizes = [2, 128], strides = [1, 1]} : vector<16x128xf32> to vector<2x128xf32>
    %177 = arith.truncf %174 : vector<2x32xf32> to vector<2x32xbf16>
    %cst_34 = arith.constant dense<0.000000e+00> : vector<2x128xf32>
    %178 = tpu.matmul %177, %168, %cst_34 {dimension_numbers = #tpu.dot_dimension_numbers<[1], [0], [0], [1], [0, 0, 1, 1], [], []>} : vector<2x32xbf16>, vector<32x128xbf16>, vector<2x128xf32> -> vector<2x128xf32>
    %179 = arith.addf %176, %178 : vector<2x128xf32>
    %180 = arith.negf %179 : vector<2x128xf32>
    %181 = math.exp %180 : vector<2x128xf32>
    %cst_35 = arith.constant 1.000000e+00 : f32
    %182 = vector.broadcast %cst_35 : f32 to vector<2x128xf32>
    %183 = arith.addf %182, %181 : vector<2x128xf32>
    %184 = arith.divf %182, %183 : vector<2x128xf32>
    %185 = math.tanh %179 : vector<2x128xf32>
    %186 = vector.extract_strided_slice %184 {offsets = [0, 0], sizes = [2, 32], strides = [1, 1]} : vector<2x128xf32> to vector<2x32xf32>
    %187 = vector.extract_strided_slice %184 {offsets = [0, 32], sizes = [2, 32], strides = [1, 1]} : vector<2x128xf32> to vector<2x32xf32>
    %188 = vector.extract_strided_slice %184 {offsets = [0, 64], sizes = [2, 32], strides = [1, 1]} : vector<2x128xf32> to vector<2x32xf32>
    %189 = vector.extract_strided_slice %185 {offsets = [0, 96], sizes = [2, 32], strides = [1, 1]} : vector<2x128xf32> to vector<2x32xf32>
    %190 = arith.mulf %187, %175 : vector<2x32xf32>
    %191 = arith.mulf %186, %189 : vector<2x32xf32>
    %192 = arith.addf %190, %191 : vector<2x32xf32>
    %193 = math.tanh %192 : vector<2x32xf32>
    %194 = arith.mulf %188, %193 : vector<2x32xf32>
    %195 = vector.extract_strided_slice %173 {offsets = [2, 0], sizes = [2, 128], strides = [1, 1]} : vector<16x128xf32> to vector<2x128xf32>
    %196 = arith.truncf %194 : vector<2x32xf32> to vector<2x32xbf16>
    %cst_36 = arith.constant dense<0.000000e+00> : vector<2x128xf32>
    %197 = tpu.matmul %196, %168, %cst_36 {dimension_numbers = #tpu.dot_dimension_numbers<[1], [0], [0], [1], [0, 0, 1, 1], [], []>} : vector<2x32xbf16>, vector<32x128xbf16>, vector<2x128xf32> -> vector<2x128xf32>
    %198 = arith.addf %195, %197 : vector<2x128xf32>
    %199 = arith.negf %198 : vector<2x128xf32>
    %200 = math.exp %199 : vector<2x128xf32>
    %cst_37 = arith.constant 1.000000e+00 : f32
    %201 = vector.broadcast %cst_37 : f32 to vector<2x128xf32>
    %202 = arith.addf %201, %200 : vector<2x128xf32>
    %203 = arith.divf %201, %202 : vector<2x128xf32>
    %204 = math.tanh %198 : vector<2x128xf32>
    %205 = vector.extract_strided_slice %203 {offsets = [0, 0], sizes = [2, 32], strides = [1, 1]} : vector<2x128xf32> to vector<2x32xf32>
    %206 = vector.extract_strided_slice %203 {offsets = [0, 32], sizes = [2, 32], strides = [1, 1]} : vector<2x128xf32> to vector<2x32xf32>
    %207 = vector.extract_strided_slice %203 {offsets = [0, 64], sizes = [2, 32], strides = [1, 1]} : vector<2x128xf32> to vector<2x32xf32>
    %208 = vector.extract_strided_slice %204 {offsets = [0, 96], sizes = [2, 32], strides = [1, 1]} : vector<2x128xf32> to vector<2x32xf32>
    %209 = arith.mulf %206, %192 : vector<2x32xf32>
    %210 = arith.mulf %205, %208 : vector<2x32xf32>
    %211 = arith.addf %209, %210 : vector<2x32xf32>
    %212 = math.tanh %211 : vector<2x32xf32>
    %213 = arith.mulf %207, %212 : vector<2x32xf32>
    %214 = vector.extract_strided_slice %173 {offsets = [4, 0], sizes = [2, 128], strides = [1, 1]} : vector<16x128xf32> to vector<2x128xf32>
    %215 = arith.truncf %213 : vector<2x32xf32> to vector<2x32xbf16>
    %cst_38 = arith.constant dense<0.000000e+00> : vector<2x128xf32>
    %216 = tpu.matmul %215, %168, %cst_38 {dimension_numbers = #tpu.dot_dimension_numbers<[1], [0], [0], [1], [0, 0, 1, 1], [], []>} : vector<2x32xbf16>, vector<32x128xbf16>, vector<2x128xf32> -> vector<2x128xf32>
    %217 = arith.addf %214, %216 : vector<2x128xf32>
    %218 = arith.negf %217 : vector<2x128xf32>
    %219 = math.exp %218 : vector<2x128xf32>
    %cst_39 = arith.constant 1.000000e+00 : f32
    %220 = vector.broadcast %cst_39 : f32 to vector<2x128xf32>
    %221 = arith.addf %220, %219 : vector<2x128xf32>
    %222 = arith.divf %220, %221 : vector<2x128xf32>
    %223 = math.tanh %217 : vector<2x128xf32>
    %224 = vector.extract_strided_slice %222 {offsets = [0, 0], sizes = [2, 32], strides = [1, 1]} : vector<2x128xf32> to vector<2x32xf32>
    %225 = vector.extract_strided_slice %222 {offsets = [0, 32], sizes = [2, 32], strides = [1, 1]} : vector<2x128xf32> to vector<2x32xf32>
    %226 = vector.extract_strided_slice %222 {offsets = [0, 64], sizes = [2, 32], strides = [1, 1]} : vector<2x128xf32> to vector<2x32xf32>
    %227 = vector.extract_strided_slice %223 {offsets = [0, 96], sizes = [2, 32], strides = [1, 1]} : vector<2x128xf32> to vector<2x32xf32>
    %228 = arith.mulf %225, %211 : vector<2x32xf32>
    %229 = arith.mulf %224, %227 : vector<2x32xf32>
    %230 = arith.addf %228, %229 : vector<2x32xf32>
    %231 = math.tanh %230 : vector<2x32xf32>
    %232 = arith.mulf %226, %231 : vector<2x32xf32>
    %233 = vector.extract_strided_slice %173 {offsets = [6, 0], sizes = [2, 128], strides = [1, 1]} : vector<16x128xf32> to vector<2x128xf32>
    %234 = arith.truncf %232 : vector<2x32xf32> to vector<2x32xbf16>
    %cst_40 = arith.constant dense<0.000000e+00> : vector<2x128xf32>
    %235 = tpu.matmul %234, %168, %cst_40 {dimension_numbers = #tpu.dot_dimension_numbers<[1], [0], [0], [1], [0, 0, 1, 1], [], []>} : vector<2x32xbf16>, vector<32x128xbf16>, vector<2x128xf32> -> vector<2x128xf32>
    %236 = arith.addf %233, %235 : vector<2x128xf32>
    %237 = arith.negf %236 : vector<2x128xf32>
    %238 = math.exp %237 : vector<2x128xf32>
    %cst_41 = arith.constant 1.000000e+00 : f32
    %239 = vector.broadcast %cst_41 : f32 to vector<2x128xf32>
    %240 = arith.addf %239, %238 : vector<2x128xf32>
    %241 = arith.divf %239, %240 : vector<2x128xf32>
    %242 = math.tanh %236 : vector<2x128xf32>
    %243 = vector.extract_strided_slice %241 {offsets = [0, 0], sizes = [2, 32], strides = [1, 1]} : vector<2x128xf32> to vector<2x32xf32>
    %244 = vector.extract_strided_slice %241 {offsets = [0, 32], sizes = [2, 32], strides = [1, 1]} : vector<2x128xf32> to vector<2x32xf32>
    %245 = vector.extract_strided_slice %241 {offsets = [0, 64], sizes = [2, 32], strides = [1, 1]} : vector<2x128xf32> to vector<2x32xf32>
    %246 = vector.extract_strided_slice %242 {offsets = [0, 96], sizes = [2, 32], strides = [1, 1]} : vector<2x128xf32> to vector<2x32xf32>
    %247 = arith.mulf %244, %230 : vector<2x32xf32>
    %248 = arith.mulf %243, %246 : vector<2x32xf32>
    %249 = arith.addf %247, %248 : vector<2x32xf32>
    %250 = math.tanh %249 : vector<2x32xf32>
    %251 = arith.mulf %245, %250 : vector<2x32xf32>
    %252 = vector.extract_strided_slice %173 {offsets = [8, 0], sizes = [2, 128], strides = [1, 1]} : vector<16x128xf32> to vector<2x128xf32>
    %253 = arith.truncf %251 : vector<2x32xf32> to vector<2x32xbf16>
    %cst_42 = arith.constant dense<0.000000e+00> : vector<2x128xf32>
    %254 = tpu.matmul %253, %168, %cst_42 {dimension_numbers = #tpu.dot_dimension_numbers<[1], [0], [0], [1], [0, 0, 1, 1], [], []>} : vector<2x32xbf16>, vector<32x128xbf16>, vector<2x128xf32> -> vector<2x128xf32>
    %255 = arith.addf %252, %254 : vector<2x128xf32>
    %256 = arith.negf %255 : vector<2x128xf32>
    %257 = math.exp %256 : vector<2x128xf32>
    %cst_43 = arith.constant 1.000000e+00 : f32
    %258 = vector.broadcast %cst_43 : f32 to vector<2x128xf32>
    %259 = arith.addf %258, %257 : vector<2x128xf32>
    %260 = arith.divf %258, %259 : vector<2x128xf32>
    %261 = math.tanh %255 : vector<2x128xf32>
    %262 = vector.extract_strided_slice %260 {offsets = [0, 0], sizes = [2, 32], strides = [1, 1]} : vector<2x128xf32> to vector<2x32xf32>
    %263 = vector.extract_strided_slice %260 {offsets = [0, 32], sizes = [2, 32], strides = [1, 1]} : vector<2x128xf32> to vector<2x32xf32>
    %264 = vector.extract_strided_slice %260 {offsets = [0, 64], sizes = [2, 32], strides = [1, 1]} : vector<2x128xf32> to vector<2x32xf32>
    %265 = vector.extract_strided_slice %261 {offsets = [0, 96], sizes = [2, 32], strides = [1, 1]} : vector<2x128xf32> to vector<2x32xf32>
    %266 = arith.mulf %263, %249 : vector<2x32xf32>
    %267 = arith.mulf %262, %265 : vector<2x32xf32>
    %268 = arith.addf %266, %267 : vector<2x32xf32>
    %269 = math.tanh %268 : vector<2x32xf32>
    %270 = arith.mulf %264, %269 : vector<2x32xf32>
    %271 = vector.extract_strided_slice %173 {offsets = [10, 0], sizes = [2, 128], strides = [1, 1]} : vector<16x128xf32> to vector<2x128xf32>
    %272 = arith.truncf %270 : vector<2x32xf32> to vector<2x32xbf16>
    %cst_44 = arith.constant dense<0.000000e+00> : vector<2x128xf32>
    %273 = tpu.matmul %272, %168, %cst_44 {dimension_numbers = #tpu.dot_dimension_numbers<[1], [0], [0], [1], [0, 0, 1, 1], [], []>} : vector<2x32xbf16>, vector<32x128xbf16>, vector<2x128xf32> -> vector<2x128xf32>
    %274 = arith.addf %271, %273 : vector<2x128xf32>
    %275 = arith.negf %274 : vector<2x128xf32>
    %276 = math.exp %275 : vector<2x128xf32>
    %cst_45 = arith.constant 1.000000e+00 : f32
    %277 = vector.broadcast %cst_45 : f32 to vector<2x128xf32>
    %278 = arith.addf %277, %276 : vector<2x128xf32>
    %279 = arith.divf %277, %278 : vector<2x128xf32>
    %280 = math.tanh %274 : vector<2x128xf32>
    %281 = vector.extract_strided_slice %279 {offsets = [0, 0], sizes = [2, 32], strides = [1, 1]} : vector<2x128xf32> to vector<2x32xf32>
    %282 = vector.extract_strided_slice %279 {offsets = [0, 32], sizes = [2, 32], strides = [1, 1]} : vector<2x128xf32> to vector<2x32xf32>
    %283 = vector.extract_strided_slice %279 {offsets = [0, 64], sizes = [2, 32], strides = [1, 1]} : vector<2x128xf32> to vector<2x32xf32>
    %284 = vector.extract_strided_slice %280 {offsets = [0, 96], sizes = [2, 32], strides = [1, 1]} : vector<2x128xf32> to vector<2x32xf32>
    %285 = arith.mulf %282, %268 : vector<2x32xf32>
    %286 = arith.mulf %281, %284 : vector<2x32xf32>
    %287 = arith.addf %285, %286 : vector<2x32xf32>
    %288 = math.tanh %287 : vector<2x32xf32>
    %289 = arith.mulf %283, %288 : vector<2x32xf32>
    %290 = vector.extract_strided_slice %173 {offsets = [12, 0], sizes = [2, 128], strides = [1, 1]} : vector<16x128xf32> to vector<2x128xf32>
    %291 = arith.truncf %289 : vector<2x32xf32> to vector<2x32xbf16>
    %cst_46 = arith.constant dense<0.000000e+00> : vector<2x128xf32>
    %292 = tpu.matmul %291, %168, %cst_46 {dimension_numbers = #tpu.dot_dimension_numbers<[1], [0], [0], [1], [0, 0, 1, 1], [], []>} : vector<2x32xbf16>, vector<32x128xbf16>, vector<2x128xf32> -> vector<2x128xf32>
    %293 = arith.addf %290, %292 : vector<2x128xf32>
    %294 = arith.negf %293 : vector<2x128xf32>
    %295 = math.exp %294 : vector<2x128xf32>
    %cst_47 = arith.constant 1.000000e+00 : f32
    %296 = vector.broadcast %cst_47 : f32 to vector<2x128xf32>
    %297 = arith.addf %296, %295 : vector<2x128xf32>
    %298 = arith.divf %296, %297 : vector<2x128xf32>
    %299 = math.tanh %293 : vector<2x128xf32>
    %300 = vector.extract_strided_slice %298 {offsets = [0, 0], sizes = [2, 32], strides = [1, 1]} : vector<2x128xf32> to vector<2x32xf32>
    %301 = vector.extract_strided_slice %298 {offsets = [0, 32], sizes = [2, 32], strides = [1, 1]} : vector<2x128xf32> to vector<2x32xf32>
    %302 = vector.extract_strided_slice %298 {offsets = [0, 64], sizes = [2, 32], strides = [1, 1]} : vector<2x128xf32> to vector<2x32xf32>
    %303 = vector.extract_strided_slice %299 {offsets = [0, 96], sizes = [2, 32], strides = [1, 1]} : vector<2x128xf32> to vector<2x32xf32>
    %304 = arith.mulf %301, %287 : vector<2x32xf32>
    %305 = arith.mulf %300, %303 : vector<2x32xf32>
    %306 = arith.addf %304, %305 : vector<2x32xf32>
    %307 = math.tanh %306 : vector<2x32xf32>
    %308 = arith.mulf %302, %307 : vector<2x32xf32>
    %309 = vector.extract_strided_slice %173 {offsets = [14, 0], sizes = [2, 128], strides = [1, 1]} : vector<16x128xf32> to vector<2x128xf32>
    %310 = arith.truncf %308 : vector<2x32xf32> to vector<2x32xbf16>
    %cst_48 = arith.constant dense<0.000000e+00> : vector<2x128xf32>
    %311 = tpu.matmul %310, %168, %cst_48 {dimension_numbers = #tpu.dot_dimension_numbers<[1], [0], [0], [1], [0, 0, 1, 1], [], []>} : vector<2x32xbf16>, vector<32x128xbf16>, vector<2x128xf32> -> vector<2x128xf32>
    %312 = arith.addf %309, %311 : vector<2x128xf32>
    %313 = arith.negf %312 : vector<2x128xf32>
    %314 = math.exp %313 : vector<2x128xf32>
    %cst_49 = arith.constant 1.000000e+00 : f32
    %315 = vector.broadcast %cst_49 : f32 to vector<2x128xf32>
    %316 = arith.addf %315, %314 : vector<2x128xf32>
    %317 = arith.divf %315, %316 : vector<2x128xf32>
    %318 = math.tanh %312 : vector<2x128xf32>
    %319 = vector.extract_strided_slice %317 {offsets = [0, 0], sizes = [2, 32], strides = [1, 1]} : vector<2x128xf32> to vector<2x32xf32>
    %320 = vector.extract_strided_slice %317 {offsets = [0, 32], sizes = [2, 32], strides = [1, 1]} : vector<2x128xf32> to vector<2x32xf32>
    %321 = vector.extract_strided_slice %317 {offsets = [0, 64], sizes = [2, 32], strides = [1, 1]} : vector<2x128xf32> to vector<2x32xf32>
    %322 = vector.extract_strided_slice %318 {offsets = [0, 96], sizes = [2, 32], strides = [1, 1]} : vector<2x128xf32> to vector<2x32xf32>
    %323 = arith.mulf %320, %306 : vector<2x32xf32>
    %324 = arith.mulf %319, %322 : vector<2x32xf32>
    %325 = arith.addf %323, %324 : vector<2x32xf32>
    %326 = math.tanh %325 : vector<2x32xf32>
    %327 = arith.mulf %321, %326 : vector<2x32xf32>
    %c0_50 = arith.constant 0 : index
    %c0_51 = arith.constant 0 : index
    %328 = vector.load %arg7[%c0_50, %c0_51] : memref<32x32xf32, #tpu.memory_space<vmem>>, vector<32x32xf32>
    %329 = arith.truncf %328 : vector<32x32xf32> to vector<32x32xbf16>
    %c0_52 = arith.constant 0 : index
    %c0_53 = arith.constant 0 : index
    %330 = vector.load %arg8[%c0_52, %c0_53] : memref<1x32xf32, #tpu.memory_space<vmem>>, vector<1x32xf32>
    %c0_54 = arith.constant 0 : index
    %c0_55 = arith.constant 0 : index
    %331 = vector.load %arg9[%c0_54, %c0_55] : memref<32x32xf32, #tpu.memory_space<vmem>>, vector<32x32xf32>
    %332 = arith.truncf %331 : vector<32x32xf32> to vector<32x32xbf16>
    %c0_56 = arith.constant 0 : index
    %c0_57 = arith.constant 0 : index
    %333 = vector.load %arg10[%c0_56, %c0_57] : memref<1x32xf32, #tpu.memory_space<vmem>>, vector<1x32xf32>
    %c0_58 = arith.constant 0 : index
    %c0_59 = arith.constant 0 : index
    %334 = vector.load %arg11[%c0_58, %c0_59] : memref<32x32xf32, #tpu.memory_space<vmem>>, vector<32x32xf32>
    %335 = arith.truncf %334 : vector<32x32xf32> to vector<32x32xbf16>
    %c0_60 = arith.constant 0 : index
    %c0_61 = arith.constant 0 : index
    %336 = vector.load %arg12[%c0_60, %c0_61] : memref<1x32xf32, #tpu.memory_space<vmem>>, vector<1x32xf32>
    %c0_62 = arith.constant 0 : index
    %c0_63 = arith.constant 0 : index
    %337 = vector.load %arg13[%c0_62, %c0_63] : memref<32x128xf32, #tpu.memory_space<vmem>>, vector<32x128xf32>
    %338 = arith.truncf %337 : vector<32x128xf32> to vector<32x128xbf16>
    %c0_64 = arith.constant 0 : index
    %c0_65 = arith.constant 0 : index
    %339 = vector.load %arg14[%c0_64, %c0_65] : memref<1x128xf32, #tpu.memory_space<vmem>>, vector<1x128xf32>
    %340 = tpu.concatenate %163, %327 in 0 : vector<2x32xf32>, vector<2x32xf32> -> vector<4x32xf32>
    %cst_66 = arith.constant 0.000000e+00 : f32
    %341 = vector.broadcast %cst_66 : f32 to vector<4x32xf32>
    %342 = tpu.concatenate %340, %341 in 0 : vector<4x32xf32>, vector<4x32xf32> -> vector<8x32xf32>
    %cst_67 = arith.constant 0.000000e+00 : f32
    %343 = vector.broadcast %cst_67 : f32 to vector<8x32xf32>
    %344 = arith.maximumf %342, %343 : vector<8x32xf32>
    %345 = arith.truncf %344 : vector<8x32xf32> to vector<8x32xbf16>
    %cst_68 = arith.constant dense<0.000000e+00> : vector<8x32xf32>
    %346 = tpu.matmul %345, %329, %cst_68 {dimension_numbers = #tpu.dot_dimension_numbers<[1], [0], [0], [1], [0, 0, 1, 1], [], []>} : vector<8x32xbf16>, vector<32x32xbf16>, vector<8x32xf32> -> vector<8x32xf32>
    %347 = vector.broadcast %330 : vector<1x32xf32> to vector<8x32xf32>
    %348 = arith.addf %346, %347 : vector<8x32xf32>
    %349 = arith.truncf %348 : vector<8x32xf32> to vector<8x32xbf16>
    %cst_69 = arith.constant dense<0.000000e+00> : vector<8x32xf32>
    %350 = tpu.matmul %349, %332, %cst_69 {dimension_numbers = #tpu.dot_dimension_numbers<[1], [0], [0], [1], [0, 0, 1, 1], [], []>} : vector<8x32xbf16>, vector<32x32xbf16>, vector<8x32xf32> -> vector<8x32xf32>
    %351 = vector.broadcast %333 : vector<1x32xf32> to vector<8x32xf32>
    %352 = arith.addf %350, %351 : vector<8x32xf32>
    %353 = arith.truncf %352 : vector<8x32xf32> to vector<8x32xbf16>
    %cst_70 = arith.constant dense<0.000000e+00> : vector<8x32xf32>
    %354 = tpu.matmul %353, %335, %cst_70 {dimension_numbers = #tpu.dot_dimension_numbers<[1], [0], [0], [1], [0, 0, 1, 1], [], []>} : vector<8x32xbf16>, vector<32x32xbf16>, vector<8x32xf32> -> vector<8x32xf32>
    %355 = vector.broadcast %336 : vector<1x32xf32> to vector<8x32xf32>
    %356 = arith.addf %354, %355 : vector<8x32xf32>
    %cst_71 = arith.constant 0.000000e+00 : f32
    %357 = vector.broadcast %cst_71 : f32 to vector<8x32xf32>
    %358 = arith.maximumf %356, %357 : vector<8x32xf32>
    %359 = arith.truncf %358 : vector<8x32xf32> to vector<8x32xbf16>
    %cst_72 = arith.constant dense<0.000000e+00> : vector<8x128xf32>
    %360 = tpu.matmul %359, %338, %cst_72 {dimension_numbers = #tpu.dot_dimension_numbers<[1], [0], [0], [1], [0, 0, 1, 1], [], []>} : vector<8x32xbf16>, vector<32x128xbf16>, vector<8x128xf32> -> vector<8x128xf32>
    %361 = vector.broadcast %339 : vector<1x128xf32> to vector<8x128xf32>
    %362 = arith.addf %360, %361 : vector<8x128xf32>
    %c0_73 = arith.constant 0 : index
    %c0_74 = arith.constant 0 : index
    %363 = vector.load %arg15[%c0_73, %c0_74] : memref<8x128xf32, #tpu.memory_space<vmem>>, vector<8x128xf32>
    tpu.vector_store %arg15[%c0_73, %c0_74], %362 {strides = array<i32>} : memref<8x128xf32, #tpu.memory_space<vmem>>, vector<8x128xf32>,
    return
  }
}

</mosaic_0001>

<bundles_post_ra>
// kernel: tpu_custom_call.1
= control target key start
LH: loop header
LB: loop body
LE: loop exit
PB: predicated region body
PF: predicated region fallthrough
CT: control target
= control target key end

     0   :  { %20 = vsyncpa [#allocation3], 0  ;;  %s2216_s0 = inlined_call_operand.vmem [shape: f32[16,8], index: 0, kind: input, shape index: {}]   ;;  %s2217_s1 = inlined_call_operand.hbm [shape: f32[8,128], index: 1, kind: input, shape index: {}]   ;;  %s2218_s2 = inlined_call_operand.hbm [shape: f32[32,128], index: 2, kind: input, shape index: {}]   ;;  %s2219_s3 = inlined_call_operand.hbm [shape: f32[1,128], index: 3, kind: input, shape index: {}]   ;;  %s2220_s4 = inlined_call_operand.hbm [shape: f32[32,128], index: 4, kind: input, shape index: {}]   ;;  %s2221_s5 = inlined_call_operand.hbm [shape: f32[32,128], index: 5, kind: input, shape index: {}]   ;;  %s2222_s6 = inlined_call_operand.hbm [shape: f32[1,128], index: 6, kind: input, shape index: {}]   ;;  %s2223_s7 = inlined_call_operand.hbm [shape: f32[32,32], index: 7, kind: input, shape index: {}]   ;;  %s2224_s8 = inlined_call_operand.hbm [shape: f32[1,32], index: 8, kind: input, shape index: {}]   ;;  %s2225_s9 = inlined_call_operand.vmem [shape: f32[32,32], index: 9, kind: input, shape index: {}]   ;;  %s2226_s10 = inlined_call_operand.vmem [shape: f32[1,32], index: 10, kind: input, shape index: {}]   ;;  %s2227_s11 = inlined_call_operand.hbm [shape: f32[32,32], index: 11, kind: input, shape index: {}]   ;;  %s2228_s12 = inlined_call_operand.vmem [shape: f32[1,32], index: 12, kind: input, shape index: {}]   ;;  %s2229_s13 = inlined_call_operand.hbm [shape: f32[32,128], index: 13, kind: input, shape index: {}]   ;;  %s2230_s14 = inlined_call_operand.vmem [shape: f32[1,128], index: 14, kind: input, shape index: {}]   ;;  %s2231_s15 = inlined_call_operand.hbm [shape: f32[8,128], index: 15, kind: output, shape index: {}]  }
   0x1   :  { %21 = vsyncpa [#allocation6], 0 }
   0x2   :  { %22 = vsyncpa [#allocation9], 0 }
   0x3   :  { %23 = vsyncpa [#allocation12], 0 }
   0x4   :  { %24 = vsyncpa [#allocation15], 0 }
   0x5   :  { %25 = vsyncpa [#allocation18], 0  ;;  %s44_s20 = sshll.u32 %s2218_s2, 4  ;;  %s45_s20 = int_to_ptr.hbm [resolvable:$true] %s44_s20 }
   0x6   :  { %26 = vsyncpa [#allocation4], 0  ;;  %s1896_s21 = smov [#allocation5]   ;;  %s68_s25 = sshll.u32 %s2220_s4, 4  ;;  %s69_s25 = int_to_ptr.hbm [resolvable:$true] %s68_s25 }
   0x7   :  { %s46_s22 = sshll.u32 %s1896_s21, 4  ;;  %s1897_s26 = smov 128   ;;  %s47_s22 = int_to_ptr.vmem [resolvable:$true] %s46_s22 }
   0x8   :  { %s1898_s27 = smov 8   ;;  %s1899_s28 = smov [#allocation8]  }
   0x9   :  { %52 = dma.hbm_to_vmem [thread:$0]  %s45_s20, 512, %s47_s22, [#allocation6], %s1897_s26, %s1897_s26, %s1898_s27  }
   0xa   :  { %s70_s29 = sshll.u32 %s1899_s28, 4  ;;  %s95_s16 = sshll.u32 %s2222_s6, 4  ;;  %s71_s29 = int_to_ptr.vmem [resolvable:$true] %s70_s29  ;;  %s96_s16 = int_to_ptr.hbm [resolvable:$true] %s95_s16 }
   0xb   :  { %76 = dma.hbm_to_vmem [thread:$0]  %s69_s25, 512, %s71_s29, [#allocation9], %s1897_s26, %s1897_s26, %s1898_s27  }
   0xc   :  { %s119_s18 = sshll.u32 %s2224_s8, 4  ;;  %s1900_s19 = smov [#allocation11]   ;;  %s120_s18 = int_to_ptr.hbm [resolvable:$true] %s119_s18 }
   0xd   :  { %s97_s21 = sshll.u32 %s1900_s19, 4  ;;  %s1901_s20 = smov [#allocation14]   ;;  %s98_s21 = int_to_ptr.vmem [resolvable:$true] %s97_s21 }
   0xe   :  { %100 = dma.hbm_to_vmem [thread:$0]  %s96_s16, 16, %s98_s21, [#allocation12]  }
   0xf   :  { %s121_s22 = sshll.u32 %s1901_s20, 4  ;;  %s34_s6 = sshll.u32 %s2217_s1, 4  ;;  %s122_s22 = int_to_ptr.vmem [resolvable:$true] %s121_s22  ;;  %s35_s6 = int_to_ptr.hbm [resolvable:$true] %s34_s6 }
  0x10   :  { %124 = dma.hbm_to_vmem [thread:$0]  %s120_s18, 16, %s122_s22, [#allocation15]  }
  0x11   :  { %s58_s29 = sshll.u32 %s2219_s3, 4  ;;  %s1902_s30 = smov [#allocation2]   ;;  %s59_s29 = int_to_ptr.hbm [resolvable:$true] %s58_s29 }
  0x12   :  { %s36_s8 = sshll.u32 %s1902_s30, 4  ;;  %s1903_s2 = smov [#allocation7]   ;;  %s37_s8 = int_to_ptr.vmem [resolvable:$true] %s36_s8 }
  0x13   :  { %39 = dma.hbm_to_vmem [thread:$0]  %s35_s6, 128, %s37_s8, [#allocation3]  }
  0x14   :  { %s60_s16 = sshll.u32 %s1903_s2, 4  ;;  %s81_s19 = sshll.u32 %s2221_s5, 4  ;;  %s61_s16 = int_to_ptr.vmem [resolvable:$true] %s60_s16  ;;  %s82_s19 = int_to_ptr.hbm [resolvable:$true] %s81_s19 }
  0x15   :  { %63 = dma.hbm_to_vmem [thread:$0]  %s59_s29, 16, %s61_s16, [#allocation6]  }
  0x16   :  { %s105_s21 = sshll.u32 %s2223_s7, 4  ;;  %s1904_s20 = smov [#allocation10]   ;;  %s106_s21 = int_to_ptr.hbm [resolvable:$true] %s105_s21 }
  0x17   :  { %s83_s3 = sshll.u32 %s1904_s20, 4  ;;  %s1905_s22 = smov [#allocation13]   ;;  %s84_s3 = int_to_ptr.vmem [resolvable:$true] %s83_s3 }
  0x18   :  { %89 = dma.hbm_to_vmem [thread:$0]  %s82_s19, 512, %s84_s3, [#allocation9], %s1897_s26, %s1897_s26, %s1898_s27  }
  0x19   :  { %s107_s23 = sshll.u32 %s1905_s22, 4  ;;  %s133_s5 = sshll.u32 %s2227_s11, 4  ;;  %s108_s23 = int_to_ptr.vmem [resolvable:$true] %s107_s23  ;;  %s134_s5 = int_to_ptr.hbm [resolvable:$true] %s133_s5 }
  0x1a   :  { %113 = dma.hbm_to_vmem [thread:$0]  %s106_s21, 512, %s108_s23, [#allocation12], %s1897_s26, %s1897_s26, %s1898_s27  }
  0x1b   :  { %s148_s25 = sshll.u32 %s2229_s13, 4  ;;  %s1906_s29 = smov [#allocation16]   ;;  %s149_s25 = int_to_ptr.hbm [resolvable:$true] %s148_s25 }
  0x1c   :  { %s135_s30 = sshll.u32 %s1906_s29, 4  ;;  %s1907_s8 = smov [#allocation17]   ;;  %s136_s30 = int_to_ptr.vmem [resolvable:$true] %s135_s30 }
  0x1d   :  { %141 = dma.hbm_to_vmem [thread:$0]  %s134_s5, 512, %s136_s30, [#allocation15], %s1897_s26, %s1897_s26, %s1898_s27  }
  0x1e   :  { %s150_s11 = sshll.u32 %s1907_s8, 4  ;;  %s151_s11 = int_to_ptr.vmem [resolvable:$true] %s150_s11 }
  0x1f   :  { %156 = dma.hbm_to_vmem [thread:$0]  %s149_s25, 512, %s151_s11, [#allocation18], %s1897_s26, %s1897_s26, %s1898_s27  }
  0x20   :  { %1882 = dma.done.wait [#allocation3], 128  }
  0x21   :  { %1883 = vsyncadd [#allocation3], 4294967168 }
  0x22   :  { %1884 = dma.done.wait [#allocation6], 528  }
  0x23   :  { %1885 = vsyncadd [#allocation6], 4294966768 }
  0x24   :  { %1886 = dma.done.wait [#allocation9], 1024  }
  0x25   :  { %1887 = vsyncadd [#allocation9], 4294966272 }
  0x26   :  { %1888 = dma.done.wait [#allocation12], 528  }
  0x27   :  { %1889 = vsyncadd [#allocation12], 4294966768 }
  0x28   :  { %1890 = dma.done.wait [#allocation15], 528  }
  0x29   :  { %1891 = vsyncadd [#allocation15], 4294966768 }
  0x2a   :  { %1892 = dma.done.wait [#allocation18], 512  }
  0x2b   :  { %1893 = vsyncadd [#allocation18], 4294966784  ;;  %v206_v0 = vld [vmem:[#allocation5 + $0x10] sm:$0xff]  ;;  %v207_v1 = vld [vmem:[#allocation5 + $0x18] sm:$0xff]  ;;  %vm219_vm0 = vcmask 1043456   ;;  %vm215_vm1 = vcmask 64512  }
  0x2c   :  { %v202_v2 = vld [vmem:[#allocation2] sm:$0xff]  ;;  %v209_v3 = vpack.c.bf16 %v207_v1, %v206_v0  ;;  %v201_v6 = vld [vmem:[%s2216_s0 + $0x8] sm:$0xff]  ;;  %v205_v8 = vld [vmem:[#allocation5 + $0x8] sm:$0xff]  ;;  %v1908_v12 = vmov 0   ;;  %s1910_s16 = smov 64   ;;  %vm237_vm6 = vcmask 261120  }
  0x2d   :  { %v203_v4 = vpack.c.bf16 %v202_v2, %v202_v2  ;;  %v200_v5 = vld [vmem:[%s2216_s0] sm:$0xff]  ;;  %v204_v7 = vld [vmem:[#allocation5] sm:$0xff]  ;;  %s1909_s0 = smov 32   ;;  %vm742_vm15 = vcmask 1041408   ;;  %s1417_s29 = sshll.u32 %s2231_s15, 4  ;;  %s1418_s29 = int_to_ptr.hbm [resolvable:$true] %s1417_s29 }
  0x2e   :  { %247 = vmatpush.bf16.msra.mxu1 %v209_v3  ;;  %v211_v10 = vpack.c.bf16 %v201_v6, %v200_v5  ;;  %v208_v11 = vpack.c.bf16 %v205_v8, %v204_v7  ;;  %305 = vmatpush.bf16.msra.mxu2 %v209_v3  ;;  %v2048_v13 = vld [vmem:[#allocation7] ss:$0 sm:$0xff] }
  0x2f   :  { %v221_v9 = vsel %vm219_vm0, %v203_v4, 0  ;;  %370 = vmatpush.bf16.msra.mxu3 %v209_v3 }
  0x30   :  { %230 = vmatpush.bf16.msra.mxu0 %v221_v9 }
  0x32   :  { %248 = vmatpush.bf16.msra.mxu1 %v208_v11  ;;  %306 = vmatpush.bf16.msra.mxu2 %v208_v11 }
  0x33   :  { %1432 = vmatmul.msk.bf16.vlgmr.msra.gmra.mxu0 %vm215_vm1, %v211_v10  ;;  %371 = vmatpush.bf16.msra.mxu3 %v208_v11 }
  0x34   :  { %435 = vmatpush.bf16.msrb.mxu0 %v209_v3 }
  0x35   :  { %249 = vmatmul.bf16.vlgmr.msra.gmra.mxu1 %v1908_v12 }
  0x36   :  { %500 = vmatpush.bf16.msrb.mxu1 %v209_v3  ;;  %561 = vmatpush.bf16.msrb.mxu2 %v209_v3 }
  0x37   :  { %626 = vmatpush.bf16.msrb.mxu3 %v209_v3 }
  0x38   :  { %436 = vmatpush.bf16.msrb.mxu0 %v208_v11 }
  0x3a   :  { %501 = vmatpush.bf16.msrb.mxu1 %v208_v11  ;;  %562 = vmatpush.bf16.msrb.mxu2 %v208_v11 }
  0x3b   :  { %627 = vmatpush.bf16.msrb.mxu3 %v208_v11 }
  0x3c   :  { %691 = vmatpush.bf16.msra.mxu0 %v209_v3 }
  0x40   :  { %692 = vmatpush.bf16.msra.mxu0 %v208_v11 }
  0xb0   :  { %v232_v14 = vpop.f32.mrf.mxu0 }
  0xb1   :  { %v2051_v15 = vadd.f32 %v2048_v13, %v232_v14 }
  0xb2   :  { %v250_v16 = vpop.f32.mrf.mxu1 }
  0xb3   :  { %v254_v17 = vadd.f32 %v250_v16, %v2051_v15 }
  0xb5   :  { %1490 = vtanh.f32 %v254_v17  ;;  %v1433_v20 = vmul.f32 -1.442695, %v254_v17 }
  0xb7   :  { %1492 = vpow2.f32 %v1433_v20 }
  0xba   :  { %v252_v18 = vpop.f32.mrf.mxu1 }
  0xbb   :  { %v1491_v19 = vpop.eup %1490 }
  0xbc   :  { %277 = vrot.lane.b32.xlu0 %v1491_v19, %s1909_s0 }
  0xbd   :  { %v1493_v21 = vpop.eup %1492 }
  0xbe   :  { %v258_v22 = vadd.f32 1.0, %v1493_v21 }
  0xc0   :  { %1494 = vrcp.f32 %v258_v22  ;;  %v270_v28 = vand.u32 2147483648, %v258_v22  ;;  %vm264_vm3 = vweird.f32 %v258_v22  ;;  %v268_v29 = vand.u32 2147483647, %v258_v22 }
  0xc2   :  { %v271_v31 = vor.u32 1.1754944e-38, %v270_v28  ;;  %vm269_vm5 = vcmp.eq.f32.partialorder %v268_v29, 8.507059e+37 }
  0xc6   :  { %v1495_v23 = vpop.eup %1494 }
  0xc7   :  { %v260_v24 = vmul.f32 %v1495_v23, %v258_v22  ;;  %vm265_vm2 = vweird.f32 %v1495_v23 }
  0xc8   :  { %vm266_vm4 = vmor %vm264_vm3, %vm265_vm2 }
  0xc9   :  { %v261_v25 = vsub.f32 1.0, %v260_v24 }
  0xcb   :  { %v262_v26 = vmul.f32 %v1495_v23, %v261_v25 }
  0xcd   :  { %v263_v27 = vadd.f32 %v1495_v23, %v262_v26 }
  0xcf   :  { %v267_v30 = vsel %vm266_vm4, %v1495_v23, %v263_v27 }
  0xd0   :  { %v272_v33 = vsel %vm269_vm5, %v271_v31, %v267_v30  ;;  %vm745_vm5 = vcmask 1045504  }
  0xd1   :  { %v275_v35 = vmul.f32 0.0, %v272_v33 }
 0x12e   :  { %v278_v32 = vpop.permute.xlu0 %277 }
 0x12f   :  { %v280_v34 = vmul.f32 %v278_v32, %v272_v33 }
 0x131   :  { %282 = vrot.lane.b32.xlu0 %v280_v34, %s1909_s0 }
 0x1a3   :  { %v283_v36 = vpop.permute.xlu0 %282 }
 0x1a4   :  { %v285_v37 = vadd.f32 %v283_v36, %v275_v35 }
 0x1a6   :  { %1496 = vtanh.f32 %v285_v37  ;;  %v337_v63 = vrot.slane %v285_v37, 6 }
 0x1ac   :  { %v1497_v38 = vpop.eup %1496 }
 0x1ad   :  { %288 = vrot.lane.b32.xlu1 %v1497_v38, %s1909_s0 }
 0x21f   :  { %v289_v39 = vpop.permute.xlu1 %288 }
 0x220   :  { %v2057_v40 = vmul.f32 %v289_v39, %v272_v33 }
 0x222   :  { %v292_v41 = vpack.c.bf16 %v2057_v40, %v2057_v40 }
 0x224   :  { %294 = vrot.lane.b32.xlu1 %v292_v41, %s1910_s16 }
 0x296   :  { %v295_v42 = vpop.permute.xlu1 %294 }
 0x297   :  { %1434 = vmatmul.msk.bf16.vlgmr.msra.gmra.mxu2 %vm237_vm6, %v295_v42 }
 0x31a   :  { %v308_v43 = vpop.f32.mrf.mxu2 }
 0x31b   :  { %v313_v44 = vrot.slane %v308_v43, 6 }
 0x31d   :  { %v315_v45 = vadd.f32 %v313_v44, %v2051_v15 }
 0x31f   :  { %1498 = vtanh.f32 %v315_v45  ;;  %v1435_v48 = vmul.f32 -1.442695, %v315_v45  ;;  %v234_v45 = vpop.f32.mrf.mxu0 }
 0x321   :  { %1500 = vpow2.f32 %v1435_v48 }
 0x322   :  { %v310_v46 = vpop.f32.mrf.mxu2 }
 0x325   :  { %v1499_v47 = vpop.eup %1498 }
 0x326   :  { %341 = vrot.lane.b32.xlu2 %v1499_v47, %s1909_s0 }
 0x327   :  { %v1501_v49 = vpop.eup %1500 }
 0x328   :  { %v319_v50 = vadd.f32 1.0, %v1501_v49 }
 0x32a   :  { %1502 = vrcp.f32 %v319_v50  ;;  %v331_v56 = vand.u32 2147483648, %v319_v50  ;;  %vm325_vm8 = vweird.f32 %v319_v50  ;;  %v329_v57 = vand.u32 2147483647, %v319_v50 }
 0x32c   :  { %v332_v59 = vor.u32 1.1754944e-38, %v331_v56  ;;  %vm330_vm10 = vcmp.eq.f32.partialorder %v329_v57, 8.507059e+37 }
 0x330   :  { %v1503_v51 = vpop.eup %1502 }
 0x331   :  { %v321_v52 = vmul.f32 %v1503_v51, %v319_v50  ;;  %vm326_vm7 = vweird.f32 %v1503_v51 }
 0x332   :  { %vm327_vm9 = vmor %vm325_vm8, %vm326_vm7 }
 0x333   :  { %v322_v53 = vsub.f32 1.0, %v321_v52 }
 0x335   :  { %v323_v54 = vmul.f32 %v1503_v51, %v322_v53 }
 0x337   :  { %v324_v55 = vadd.f32 %v1503_v51, %v323_v54 }
 0x339   :  { %v328_v58 = vsel %vm327_vm9, %v1503_v51, %v324_v55 }
 0x33a   :  { %v333_v61 = vsel %vm330_vm10, %v332_v59, %v328_v58 }
 0x33b   :  { %v339_v0 = vmul.f32 %v337_v63, %v333_v61 }
 0x380   :  { %v342_v60 = vpop.permute.xlu2 %341 }
 0x381   :  { %v344_v62 = vmul.f32 %v342_v60, %v333_v61 }
 0x383   :  { %346 = vrot.lane.b32.xlu2 %v344_v62, %s1909_s0 }
 0x3dd   :  { %v347_v1 = vpop.permute.xlu2 %346 }
 0x3de   :  { %v349_v2 = vadd.f32 %v347_v1, %v339_v0 }
 0x3e0   :  { %1504 = vtanh.f32 %v349_v2  ;;  %v402_v32 = vrot.slane %v349_v2, 6 }
 0x3e6   :  { %v1505_v3 = vpop.eup %1504 }
 0x3e7   :  { %352 = vrot.lane.b32.xlu0 %v1505_v3, %s1909_s0 }
 0x459   :  { %v353_v4 = vpop.permute.xlu0 %352 }
 0x45a   :  { %v355_v5 = vmul.f32 %v353_v4, %v333_v61 }
 0x45c   :  { %v356_v6 = vpack.c.bf16 %v355_v5, %v355_v5  ;;  %v743_v39 = vsel %vm742_vm15, %v2057_v40, %v355_v5 }
 0x45e   :  { %v358_v7 = vrot.slane %v356_v6, 1 }
 0x460   :  { %359 = vrot.lane.b32.xlu1 %v358_v7, %s1910_s16 }
 0x4d2   :  { %v360_v8 = vpop.permute.xlu1 %359 }
 0x4d3   :  { %1436 = vmatmul.msk.bf16.vlgmr.msra.gmra.mxu3 %vm237_vm6, %v360_v8 }
 0x556   :  { %v373_v9 = vpop.f32.mrf.mxu3 }
 0x557   :  { %v378_v10 = vrot.slane %v373_v9, 4 }
 0x559   :  { %v380_v11 = vadd.f32 %v378_v10, %v2051_v15 }
 0x55b   :  { %1506 = vtanh.f32 %v380_v11  ;;  %v1437_v17 = vmul.f32 -1.442695, %v380_v11  ;;  %v2088_v11 = vadd.f32 %v2048_v13, %v234_v45 }
 0x55d   :  { %1508 = vpow2.f32 %v1437_v17 }
 0x55e   :  { %v375_v14 = vpop.f32.mrf.mxu3 }
 0x561   :  { %v1507_v16 = vpop.eup %1506 }
 0x562   :  { %406 = vrot.lane.b32.xlu2 %v1507_v16, %s1909_s0 }
 0x563   :  { %v1509_v18 = vpop.eup %1508 }
 0x564   :  { %v384_v19 = vadd.f32 1.0, %v1509_v18 }
 0x566   :  { %1510 = vrcp.f32 %v384_v19  ;;  %v396_v25 = vand.u32 2147483648, %v384_v19  ;;  %vm390_vm12 = vweird.f32 %v384_v19  ;;  %v394_v26 = vand.u32 2147483647, %v384_v19 }
 0x568   :  { %v397_v28 = vor.u32 1.1754944e-38, %v396_v25  ;;  %vm395_vm14 = vcmp.eq.f32.partialorder %v394_v26, 8.507059e+37 }
 0x56c   :  { %v1511_v20 = vpop.eup %1510 }
 0x56d   :  { %v386_v21 = vmul.f32 %v1511_v20, %v384_v19  ;;  %vm391_vm11 = vweird.f32 %v1511_v20 }
 0x56e   :  { %vm392_vm13 = vmor %vm390_vm12, %vm391_vm11 }
 0x56f   :  { %v387_v22 = vsub.f32 1.0, %v386_v21 }
 0x571   :  { %v388_v23 = vmul.f32 %v1511_v20, %v387_v22 }
 0x573   :  { %v389_v24 = vadd.f32 %v1511_v20, %v388_v23 }
 0x575   :  { %v393_v27 = vsel %vm392_vm13, %v1511_v20, %v389_v24 }
 0x576   :  { %v398_v30 = vsel %vm395_vm14, %v397_v28, %v393_v27 }
 0x577   :  { %v404_v33 = vmul.f32 %v402_v32, %v398_v30 }
 0x5bc   :  { %v407_v29 = vpop.permute.xlu2 %406 }
 0x5bd   :  { %v409_v31 = vmul.f32 %v407_v29, %v398_v30 }
 0x5bf   :  { %411 = vrot.lane.b32.xlu0 %v409_v31, %s1909_s0 }
 0x631   :  { %v412_v34 = vpop.permute.xlu0 %411 }
 0x632   :  { %v414_v35 = vadd.f32 %v412_v34, %v404_v33 }
 0x634   :  { %1512 = vtanh.f32 %v414_v35  ;;  %v467_v0 = vrot.slane %v414_v35, 6 }
 0x63a   :  { %v1513_v36 = vpop.eup %1512 }
 0x63b   :  { %417 = vrot.lane.b32.xlu1 %v1513_v36, %s1909_s0 }
 0x6ad   :  { %v418_v37 = vpop.permute.xlu1 %417 }
 0x6ae   :  { %v420_v38 = vmul.f32 %v418_v37, %v398_v30 }
 0x6b0   :  { %v421_v41 = vpack.c.bf16 %v420_v38, %v420_v38  ;;  %v744_v42 = vsel %vm219_vm0, %v743_v39, %v420_v38 }
 0x6b2   :  { %v423_v43 = vrot.slane %v421_v41, 2 }
 0x6b4   :  { %424 = vrot.lane.b32.xlu2 %v423_v43, %s1910_s16 }
 0x70e   :  { %v425_v44 = vpop.permute.xlu2 %424 }
 0x70f   :  { %1438 = vmatmul.msk.bf16.vlgmr.msrb.gmra.mxu0 %vm237_vm6, %v425_v44 }
 0x78c   :  { %v438_v46 = vpop.f32.mrf.mxu0 }
 0x78d   :  { %v443_v47 = vrot.slane %v438_v46, 2 }
 0x78f   :  { %v445_v48 = vadd.f32 %v443_v47, %v2051_v15 }
 0x791   :  { %1514 = vtanh.f32 %v445_v48  ;;  %v1439_v40 = vmul.f32 -1.442695, %v445_v48 }
 0x793   :  { %1516 = vpow2.f32 %v1439_v40 }
 0x794   :  { %v440_v49 = vpop.f32.mrf.mxu0 }
 0x797   :  { %v1515_v50 = vpop.eup %1514 }
 0x798   :  { %471 = vrot.lane.b32.xlu0 %v1515_v50, %s1909_s0 }
 0x799   :  { %v1517_v51 = vpop.eup %1516 }
 0x79a   :  { %v449_v52 = vadd.f32 1.0, %v1517_v51 }
 0x79c   :  { %1518 = vrcp.f32 %v449_v52  ;;  %v461_v58 = vand.u32 2147483648, %v449_v52  ;;  %vm455_vm2 = vweird.f32 %v449_v52  ;;  %v459_v59 = vand.u32 2147483647, %v449_v52 }
 0x79e   :  { %v462_v60 = vor.u32 1.1754944e-38, %v461_v58  ;;  %vm460_vm4 = vcmp.eq.f32.partialorder %v459_v59, 8.507059e+37 }
 0x7a2   :  { %v1519_v53 = vpop.eup %1518 }
 0x7a3   :  { %v451_v54 = vmul.f32 %v1519_v53, %v449_v52  ;;  %vm456_vm1 = vweird.f32 %v1519_v53 }
 0x7a4   :  { %vm457_vm3 = vmor %vm455_vm2, %vm456_vm1 }
 0x7a5   :  { %v452_v55 = vsub.f32 1.0, %v451_v54 }
 0x7a7   :  { %v453_v56 = vmul.f32 %v1519_v53, %v452_v55 }
 0x7a9   :  { %v454_v57 = vadd.f32 %v1519_v53, %v453_v56 }
 0x7ab   :  { %v458_v15 = vsel %vm457_vm3, %v1519_v53, %v454_v57 }
 0x7ac   :  { %v463_v62 = vsel %vm460_vm4, %v462_v60, %v458_v15 }
 0x7ad   :  { %v469_v1 = vmul.f32 %v467_v0, %v463_v62 }
 0x80a   :  { %v472_v61 = vpop.permute.xlu0 %471 }
 0x80b   :  { %v474_v63 = vmul.f32 %v472_v61, %v463_v62 }
 0x80d   :  { %476 = vrot.lane.b32.xlu1 %v474_v63, %s1909_s0 }
 0x87f   :  { %v477_v2 = vpop.permute.xlu1 %476 }
 0x880   :  { %v479_v3 = vadd.f32 %v477_v2, %v469_v1 }
 0x882   :  { %1520 = vtanh.f32 %v479_v3  ;;  %v529_v33 = vrot.slane %v479_v3, 6 }
 0x888   :  { %v1521_v4 = vpop.eup %1520 }
 0x889   :  { %482 = vrot.lane.b32.xlu2 %v1521_v4, %s1909_s0 }
 0x8e3   :  { %v483_v5 = vpop.permute.xlu2 %482 }
 0x8e4   :  { %v485_v6 = vmul.f32 %v483_v5, %v463_v62 }
 0x8e6   :  { %v486_v7 = vpack.c.bf16 %v485_v6, %v485_v6  ;;  %v2083_v8 = vsel %vm745_vm5, %v744_v42, %v485_v6 }
 0x8e8   :  { %v488_v9 = vrot.slane %v486_v7, 3 }
 0x8ea   :  { %489 = vrot.lane.b32.xlu0 %v488_v9, %s1910_s16 }
 0x95c   :  { %v490_v10 = vpop.permute.xlu0 %489 }
 0x95d   :  { %1440 = vmatmul.msk.bf16.vlgmr.msrb.gmra.mxu1 %vm237_vm6, %v490_v10 }
 0x9da   :  { %v503_v14 = vpop.f32.mrf.mxu1 }
 0x9db   :  { %v507_v16 = vadd.f32 %v503_v14, %v2088_v11 }
 0x9dd   :  { %1522 = vtanh.f32 %v507_v16  ;;  %v1441_v19 = vmul.f32 -1.442695, %v507_v16 }
 0x9df   :  { %1524 = vpow2.f32 %v1441_v19 }
 0x9e2   :  { %v505_v17 = vpop.f32.mrf.mxu1 }
 0x9e3   :  { %v1523_v18 = vpop.eup %1522 }
 0x9e4   :  { %533 = vrot.lane.b32.xlu1 %v1523_v18, %s1909_s0 }
 0x9e5   :  { %v1525_v20 = vpop.eup %1524 }
 0x9e6   :  { %v511_v21 = vadd.f32 1.0, %v1525_v20 }
 0x9e8   :  { %1526 = vrcp.f32 %v511_v21  ;;  %v523_v13 = vand.u32 2147483648, %v511_v21  ;;  %vm517_vm8 = vweird.f32 %v511_v21  ;;  %v521_v27 = vand.u32 2147483647, %v511_v21 }
 0x9ea   :  { %v524_v29 = vor.u32 1.1754944e-38, %v523_v13  ;;  %vm522_vm10 = vcmp.eq.f32.partialorder %v521_v27, 8.507059e+37 }
 0x9ee   :  { %v1527_v22 = vpop.eup %1526 }
 0x9ef   :  { %v513_v23 = vmul.f32 %v1527_v22, %v511_v21  ;;  %vm518_vm7 = vweird.f32 %v1527_v22 }
 0x9f0   :  { %vm519_vm9 = vmor %vm517_vm8, %vm518_vm7 }
 0x9f1   :  { %v514_v24 = vsub.f32 1.0, %v513_v23 }
 0x9f3   :  { %v515_v25 = vmul.f32 %v1527_v22, %v514_v24 }
 0x9f5   :  { %v516_v26 = vadd.f32 %v1527_v22, %v515_v25 }
 0x9f7   :  { %v520_v28 = vsel %vm519_vm9, %v1527_v22, %v516_v26 }
 0x9f8   :  { %v525_v31 = vsel %vm522_vm10, %v524_v29, %v520_v28 }
 0x9f9   :  { %v531_v34 = vmul.f32 %v529_v33, %v525_v31 }
 0xa56   :  { %v534_v30 = vpop.permute.xlu1 %533 }
 0xa57   :  { %v536_v32 = vmul.f32 %v534_v30, %v525_v31 }
 0xa59   :  { %538 = vrot.lane.b32.xlu2 %v536_v32, %s1909_s0 }
 0xab3   :  { %v539_v35 = vpop.permute.xlu2 %538 }
 0xab4   :  { %v541_v36 = vadd.f32 %v539_v35, %v531_v34 }
 0xab6   :  { %1528 = vtanh.f32 %v541_v36  ;;  %v593_v61 = vrot.slane %v541_v36, 6 }
 0xabc   :  { %v1529_v37 = vpop.eup %1528 }
 0xabd   :  { %544 = vrot.lane.b32.xlu0 %v1529_v37, %s1909_s0 }
 0xb2f   :  { %v545_v38 = vpop.permute.xlu0 %544 }
 0xb30   :  { %v2094_v39 = vmul.f32 %v545_v38, %v525_v31 }
 0xb32   :  { %v548_v41 = vpack.c.bf16 %v2094_v39, %v2094_v39 }
 0xb34   :  { %550 = vrot.lane.b32.xlu1 %v548_v41, %s1910_s16 }
 0xba6   :  { %v551_v42 = vpop.permute.xlu1 %550 }
 0xba7   :  { %1442 = vmatmul.msk.bf16.vlgmr.msrb.gmra.mxu2 %vm237_vm6, %v551_v42 }
 0xc2a   :  { %v564_v43 = vpop.f32.mrf.mxu2 }
 0xc2b   :  { %v569_v44 = vrot.slane %v564_v43, 6 }
 0xc2d   :  { %v571_v45 = vadd.f32 %v569_v44, %v2088_v11 }
 0xc2f   :  { %1530 = vtanh.f32 %v571_v45  ;;  %v1443_v48 = vmul.f32 -1.442695, %v571_v45 }
 0xc31   :  { %1532 = vpow2.f32 %v1443_v48 }
 0xc32   :  { %v566_v46 = vpop.f32.mrf.mxu2 }
 0xc35   :  { %v1531_v47 = vpop.eup %1530 }
 0xc36   :  { %597 = vrot.lane.b32.xlu2 %v1531_v47, %s1909_s0 }
 0xc37   :  { %v1533_v49 = vpop.eup %1532 }
 0xc38   :  { %v575_v50 = vadd.f32 1.0, %v1533_v49 }
 0xc3a   :  { %1534 = vrcp.f32 %v575_v50  ;;  %v587_v55 = vand.u32 2147483648, %v575_v50  ;;  %vm581_vm12 = vweird.f32 %v575_v50  ;;  %v585_v56 = vand.u32 2147483647, %v575_v50 }
 0xc3c   :  { %v588_v58 = vor.u32 1.1754944e-38, %v587_v55  ;;  %vm586_vm14 = vcmp.eq.f32.partialorder %v585_v56, 8.507059e+37 }
 0xc40   :  { %v1535_v40 = vpop.eup %1534 }
 0xc41   :  { %v577_v51 = vmul.f32 %v1535_v40, %v575_v50  ;;  %vm582_vm11 = vweird.f32 %v1535_v40 }
 0xc42   :  { %vm583_vm13 = vmor %vm581_vm12, %vm582_vm11 }
 0xc43   :  { %v578_v52 = vsub.f32 1.0, %v577_v51 }
 0xc45   :  { %v579_v53 = vmul.f32 %v1535_v40, %v578_v52 }
 0xc47   :  { %v580_v54 = vadd.f32 %v1535_v40, %v579_v53 }
 0xc49   :  { %v584_v57 = vsel %vm583_vm13, %v1535_v40, %v580_v54 }
 0xc4a   :  { %v589_v15 = vsel %vm586_vm14, %v588_v58, %v584_v57 }
 0xc4b   :  { %v595_v62 = vmul.f32 %v593_v61, %v589_v15 }
 0xc90   :  { %v598_v59 = vpop.permute.xlu2 %597 }
 0xc91   :  { %v600_v60 = vmul.f32 %v598_v59, %v589_v15 }
 0xc93   :  { %602 = vrot.lane.b32.xlu0 %v600_v60, %s1909_s0 }
 0xd05   :  { %v603_v63 = vpop.permute.xlu0 %602 }
 0xd06   :  { %v605_v0 = vadd.f32 %v603_v63, %v595_v62 }
 0xd08   :  { %1536 = vtanh.f32 %v605_v0  ;;  %v658_v31 = vrot.slane %v605_v0, 6 }
 0xd0e   :  { %v1537_v1 = vpop.eup %1536 }
 0xd0f   :  { %608 = vrot.lane.b32.xlu1 %v1537_v1, %s1909_s0 }
 0xd81   :  { %v609_v2 = vpop.permute.xlu1 %608 }
 0xd82   :  { %v611_v3 = vmul.f32 %v609_v2, %v589_v15  ;;  %v758_v2 = vld [vmem:[#allocation10 + $0x10] sm:$0xff] }
 0xd84   :  { %v612_v4 = vpack.c.bf16 %v611_v3, %v611_v3  ;;  %v747_v38 = vsel %vm742_vm15, %v2094_v39, %v611_v3  ;;  %v759_v3 = vld [vmem:[#allocation10 + $0x18] sm:$0xff] }
 0xd86   :  { %v614_v5 = vrot.slane %v612_v4, 1  ;;  %v752_v4 = vld [vmem:[#allocation8 + $0x10] sm:$0xff] }
 0xd88   :  { %615 = vrot.lane.b32.xlu2 %v614_v5, %s1910_s16  ;;  %v761_v5 = vpack.c.bf16 %v759_v3, %v758_v2 }
 0xd8a   :  { %793 = vmatpush.bf16.msra.mxu2 %v761_v5  ;;  %851 = vmatpush.bf16.msra.mxu3 %v761_v5 }
 0xd8b   :  { %916 = vmatpush.bf16.msrb.mxu0 %v761_v5 }
 0xde2   :  { %v616_v6 = vpop.permute.xlu2 %615 }
 0xde3   :  { %1444 = vmatmul.msk.bf16.vlgmr.msrb.gmra.mxu3 %vm237_vm6, %v616_v6  ;;  %v753_v6 = vld [vmem:[#allocation8 + $0x18] sm:$0xff] }
 0xe66   :  { %v629_v7 = vpop.f32.mrf.mxu3 }
 0xe67   :  { %v634_v9 = vrot.slane %v629_v7, 4  ;;  %v756_v7 = vld [vmem:[#allocation10] sm:$0xff] }
 0xe69   :  { %v636_v10 = vadd.f32 %v634_v9, %v2088_v11  ;;  %v757_v9 = vld [vmem:[#allocation10 + $0x8] sm:$0xff] }
 0xe6b   :  { %1538 = vtanh.f32 %v636_v10  ;;  %v1445_v17 = vmul.f32 -1.442695, %v636_v10  ;;  %v755_v10 = vpack.c.bf16 %v753_v6, %v752_v4 }
 0xe6d   :  { %1540 = vpow2.f32 %v1445_v17  ;;  %v760_v17 = vpack.c.bf16 %v757_v9, %v756_v7  ;;  %779 = vmatpush.bf16.msra.mxu1 %v755_v10 }
 0xe6e   :  { %v631_v14 = vpop.f32.mrf.mxu3 }
 0xe6f   :  { %v750_v14 = vld [vmem:[#allocation8] sm:$0xff]  ;;  %794 = vmatpush.bf16.msra.mxu2 %v760_v17  ;;  %852 = vmatpush.bf16.msra.mxu3 %v760_v17 }
 0xe70   :  { %917 = vmatpush.bf16.msrb.mxu0 %v760_v17 }
 0xe71   :  { %v1539_v16 = vpop.eup %1538 }
 0xe72   :  { %662 = vrot.lane.b32.xlu0 %v1539_v16, %s1909_s0  ;;  %v751_v16 = vld [vmem:[#allocation8 + $0x8] sm:$0xff]  ;;  %795 = vmatmul.bf16.vlgmr.msra.gmra.mxu2 %v1908_v12 }
 0xe73   :  { %v1541_v18 = vpop.eup %1540  ;;  %1046 = vmatpush.bf16.msrb.mxu2 %v761_v5  ;;  %1107 = vmatpush.bf16.msrb.mxu3 %v761_v5 }
 0xe74   :  { %v640_v19 = vadd.f32 1.0, %v1541_v18  ;;  %v754_v18 = vpack.c.bf16 %v751_v16, %v750_v14 }
 0xe76   :  { %1542 = vrcp.f32 %v640_v19  ;;  %v652_v25 = vand.u32 2147483648, %v640_v19  ;;  %vm646_vm2 = vweird.f32 %v640_v19  ;;  %v650_v26 = vand.u32 2147483647, %v640_v19  ;;  %780 = vmatpush.bf16.msra.mxu1 %v754_v18 }
 0xe77   :  { %1047 = vmatpush.bf16.msrb.mxu2 %v760_v17  ;;  %1108 = vmatpush.bf16.msrb.mxu3 %v760_v17 }
 0xe78   :  { %v653_v27 = vor.u32 1.1754944e-38, %v652_v25  ;;  %vm651_vm4 = vcmp.eq.f32.partialorder %v650_v26, 8.507059e+37  ;;  %v2130_v25 = vld [vmem:[#allocation11] ss:$0 sm:$0xff] }
 0xe7a   :  { %981 = vmatpush.bf16.msrb.mxu1 %v761_v5 }
 0xe7c   :  { %v1543_v20 = vpop.eup %1542 }
 0xe7d   :  { %v642_v21 = vmul.f32 %v1543_v20, %v640_v19  ;;  %vm647_vm1 = vweird.f32 %v1543_v20 }
 0xe7e   :  { %vm648_vm3 = vmor %vm646_vm2, %vm647_vm1  ;;  %982 = vmatpush.bf16.msrb.mxu1 %v760_v17 }
 0xe7f   :  { %v643_v22 = vsub.f32 1.0, %v642_v21 }
 0xe81   :  { %v644_v23 = vmul.f32 %v1543_v20, %v643_v22 }
 0xe83   :  { %v645_v24 = vadd.f32 %v1543_v20, %v644_v23 }
 0xe85   :  { %v649_v13 = vsel %vm648_vm3, %v1543_v20, %v645_v24 }
 0xe86   :  { %v654_v29 = vsel %vm651_vm4, %v653_v27, %v649_v13 }
 0xe87   :  { %v660_v32 = vmul.f32 %v658_v31, %v654_v29 }
 0xee4   :  { %v663_v28 = vpop.permute.xlu0 %662 }
 0xee5   :  { %v665_v30 = vmul.f32 %v663_v28, %v654_v29 }
 0xee7   :  { %667 = vrot.lane.b32.xlu1 %v665_v30, %s1909_s0 }
 0xef5   :  { %v796_v23 = vpop.f32.mrf.mxu2 }
 0xefd   :  { %v798_v12 = vpop.f32.mrf.mxu2 }
 0xf59   :  { %v668_v33 = vpop.permute.xlu1 %667 }
 0xf5a   :  { %v670_v34 = vadd.f32 %v668_v33, %v660_v32 }
 0xf5c   :  { %1544 = vtanh.f32 %v670_v34  ;;  %v723_v61 = vrot.slane %v670_v34, 6 }
 0xf62   :  { %v1545_v35 = vpop.eup %1544 }
 0xf63   :  { %673 = vrot.lane.b32.xlu2 %v1545_v35, %s1909_s0 }
 0xfbd   :  { %v674_v36 = vpop.permute.xlu2 %673 }
 0xfbe   :  { %v676_v37 = vmul.f32 %v674_v36, %v654_v29 }
 0xfc0   :  { %v677_v41 = vpack.c.bf16 %v676_v37, %v676_v37  ;;  %v2113_v42 = vsel %vm219_vm0, %v747_v38, %v676_v37 }
 0xfc2   :  { %v679_v43 = vrot.slane %v677_v41, 2 }
 0xfc4   :  { %680 = vrot.lane.b32.xlu0 %v679_v43, %s1910_s16 }
0x1036   :  { %v681_v44 = vpop.permute.xlu0 %680 }
0x1037   :  { %1446 = vmatmul.msk.bf16.vlgmr.msra.gmra.mxu0 %vm237_vm6, %v681_v44 }
0x1038   :  { %1172 = vmatpush.bf16.msra.mxu0 %v761_v5 }
0x103c   :  { %1173 = vmatpush.bf16.msra.mxu0 %v760_v17 }
0x10b4   :  { %v694_v45 = vpop.f32.mrf.mxu0 }
0x10b5   :  { %v699_v46 = vrot.slane %v694_v45, 2 }
0x10b7   :  { %v701_v47 = vadd.f32 %v699_v46, %v2088_v11 }
0x10b9   :  { %1546 = vtanh.f32 %v701_v47  ;;  %v1447_v39 = vmul.f32 -1.442695, %v701_v47 }
0x10bb   :  { %1548 = vpow2.f32 %v1447_v39 }
0x10bc   :  { %v696_v48 = vpop.f32.mrf.mxu0 }
0x10bf   :  { %v1547_v49 = vpop.eup %1546 }
0x10c0   :  { %727 = vrot.lane.b32.xlu1 %v1547_v49, %s1909_s0 }
0x10c1   :  { %v1549_v50 = vpop.eup %1548 }
0x10c2   :  { %v705_v40 = vadd.f32 1.0, %v1549_v50 }
0x10c4   :  { %1550 = vrcp.f32 %v705_v40  ;;  %v717_v56 = vand.u32 2147483648, %v705_v40  ;;  %vm711_vm8 = vweird.f32 %v705_v40  ;;  %v715_v57 = vand.u32 2147483647, %v705_v40 }
0x10c6   :  { %v718_v58 = vor.u32 1.1754944e-38, %v717_v56  ;;  %vm716_vm10 = vcmp.eq.f32.partialorder %v715_v57, 8.507059e+37 }
0x10ca   :  { %v1551_v51 = vpop.eup %1550 }
0x10cb   :  { %v707_v52 = vmul.f32 %v1551_v51, %v705_v40  ;;  %vm712_vm7 = vweird.f32 %v1551_v51 }
0x10cc   :  { %vm713_vm9 = vmor %vm711_vm8, %vm712_vm7 }
0x10cd   :  { %v708_v53 = vsub.f32 1.0, %v707_v52 }
0x10cf   :  { %v709_v54 = vmul.f32 %v1551_v51, %v708_v53 }
0x10d1   :  { %v710_v55 = vadd.f32 %v1551_v51, %v709_v54 }
0x10d3   :  { %v714_v11 = vsel %vm713_vm9, %v1551_v51, %v710_v55 }
0x10d4   :  { %v719_v15 = vsel %vm716_vm10, %v718_v58, %v714_v11 }
0x10d5   :  { %v725_v62 = vmul.f32 %v723_v61, %v719_v15 }
0x1132   :  { %v728_v59 = vpop.permute.xlu1 %727 }
0x1133   :  { %v730_v60 = vmul.f32 %v728_v59, %v719_v15 }
0x1135   :  { %732 = vrot.lane.b32.xlu2 %v730_v60, %s1909_s0 }
0x118f   :  { %v733_v63 = vpop.permute.xlu2 %732 }
0x1190   :  { %v735_v0 = vadd.f32 %v733_v63, %v725_v62 }
0x1192   :  { %1552 = vtanh.f32 %v735_v0 }
0x1198   :  { %v1553_v1 = vpop.eup %1552 }
0x1199   :  { %738 = vrot.lane.b32.xlu0 %v1553_v1, %s1909_s0 }
0x120b   :  { %v739_v19 = vpop.permute.xlu0 %738 }
0x120c   :  { %v2122_v20 = vmul.f32 %v739_v19, %v719_v15 }
0x120e   :  { %v749_v21 = vsel %vm745_vm5, %v2113_v42, %v2122_v20 }
0x120f   :  { %v763_v22 = vpack.c.bf16 %v749_v21, %v2083_v8 }
0x1211   :  { %768 = vrot.lane.b32.xlu1 %v763_v22, %s1910_s16 }
0x1283   :  { %v769_v24 = vpop.permute.xlu1 %768 }
0x1284   :  { %1448 = vmatmul.msk.bf16.vlgmr.msra.gmra.mxu1 %vm237_vm6, %v769_v24 }
0x1285   :  { %1237 = vmatpush.bf16.msra.mxu1 %v761_v5 }
0x1289   :  { %1238 = vmatpush.bf16.msra.mxu1 %v760_v17 }
0x1301   :  { %v782_v26 = vpop.f32.mrf.mxu1 }
0x1302   :  { %v2133_v13 = vadd.f32 %v2130_v25, %v782_v26 }
0x1304   :  { %v800_v27 = vadd.f32 %v796_v23, %v2133_v13 }
0x1306   :  { %1554 = vtanh.f32 %v800_v27  ;;  %v1449_v8 = vmul.f32 -1.442695, %v800_v27 }
0x1308   :  { %1556 = vpow2.f32 %v1449_v8 }
0x130c   :  { %v1555_v28 = vpop.eup %1554 }
0x130d   :  { %823 = vrot.lane.b32.xlu2 %v1555_v28, %s1909_s0 }
0x130e   :  { %v1557_v29 = vpop.eup %1556 }
0x130f   :  { %v804_v30 = vadd.f32 1.0, %v1557_v29 }
0x1311   :  { %1558 = vrcp.f32 %v804_v30  ;;  %v816_v36 = vand.u32 2147483648, %v804_v30  ;;  %vm810_vm11 = vweird.f32 %v804_v30  ;;  %v814_v37 = vand.u32 2147483647, %v804_v30 }
0x1313   :  { %v817_v41 = vor.u32 1.1754944e-38, %v816_v36  ;;  %vm815_vm13 = vcmp.eq.f32.partialorder %v814_v37, 8.507059e+37 }
0x1317   :  { %v1559_v31 = vpop.eup %1558 }
0x1318   :  { %v806_v32 = vmul.f32 %v1559_v31, %v804_v30  ;;  %vm811_vm5 = vweird.f32 %v1559_v31 }
0x1319   :  { %vm812_vm12 = vmor %vm810_vm11, %vm811_vm5 }
0x131a   :  { %v807_v33 = vsub.f32 1.0, %v806_v32 }
0x131c   :  { %v808_v34 = vmul.f32 %v1559_v31, %v807_v33 }
0x131e   :  { %v809_v35 = vadd.f32 %v1559_v31, %v808_v34 }
0x1320   :  { %v813_v38 = vsel %vm812_vm12, %v1559_v31, %v809_v35 }
0x1321   :  { %v818_v43 = vsel %vm815_vm13, %v817_v41, %v813_v38 }
0x1322   :  { %v821_v45 = vmul.f32 0.0, %v818_v43 }
0x1367   :  { %v824_v42 = vpop.permute.xlu2 %823 }
0x1368   :  { %v826_v44 = vmul.f32 %v824_v42, %v818_v43 }
0x136a   :  { %828 = vrot.lane.b32.xlu0 %v826_v44, %s1909_s0 }
0x13dc   :  { %v829_v46 = vpop.permute.xlu0 %828 }
0x13dd   :  { %v831_v47 = vadd.f32 %v829_v46, %v821_v45 }
0x13df   :  { %1560 = vtanh.f32 %v831_v47  ;;  %v883_v5 = vrot.slane %v831_v47, 6 }
0x13e5   :  { %v1561_v48 = vpop.eup %1560 }
0x13e6   :  { %834 = vrot.lane.b32.xlu1 %v1561_v48, %s1909_s0 }
0x1458   :  { %v835_v49 = vpop.permute.xlu1 %834 }
0x1459   :  { %v837_v39 = vmul.f32 %v835_v49, %v818_v43 }
0x145b   :  { %v838_v50 = vpack.c.bf16 %v837_v39, %v837_v39 }
0x145d   :  { %840 = vrot.lane.b32.xlu2 %v838_v50, %s1910_s16 }
0x14b7   :  { %v841_v40 = vpop.permute.xlu2 %840 }
0x14b8   :  { %1450 = vmatmul.msk.bf16.vlgmr.msra.gmra.mxu3 %vm237_vm6, %v841_v40  ;;  %v784_v40 = vpop.f32.mrf.mxu1 }
0x153b   :  { %v854_v51 = vpop.f32.mrf.mxu3 }
0x153c   :  { %v859_v52 = vrot.slane %v854_v51, 6 }
0x153e   :  { %v861_v53 = vadd.f32 %v859_v52, %v2133_v13 }
0x1540   :  { %1562 = vtanh.f32 %v861_v53  ;;  %v1451_v56 = vmul.f32 -1.442695, %v861_v53 }
0x1542   :  { %1564 = vpow2.f32 %v1451_v56 }
0x1543   :  { %v856_v54 = vpop.f32.mrf.mxu3 }
0x1546   :  { %v1563_v55 = vpop.eup %1562 }
0x1547   :  { %887 = vrot.lane.b32.xlu0 %v1563_v55, %s1909_s0 }
0x1548   :  { %v1565_v57 = vpop.eup %1564 }
0x1549   :  { %v865_v11 = vadd.f32 1.0, %v1565_v57 }
0x154b   :  { %1566 = vrcp.f32 %v865_v11  ;;  %v877_v62 = vand.u32 2147483648, %v865_v11  ;;  %vm871_vm1 = vweird.f32 %v865_v11  ;;  %v875_v63 = vand.u32 2147483647, %v865_v11 }
0x154d   :  { %v878_v1 = vor.u32 1.1754944e-38, %v877_v62  ;;  %vm876_vm3 = vcmp.eq.f32.partialorder %v875_v63, 8.507059e+37 }
0x1551   :  { %v1567_v58 = vpop.eup %1566 }
0x1552   :  { %v867_v59 = vmul.f32 %v1567_v58, %v865_v11  ;;  %vm872_vm14 = vweird.f32 %v1567_v58 }
0x1553   :  { %vm873_vm2 = vmor %vm871_vm1, %vm872_vm14 }
0x1554   :  { %v868_v15 = vsub.f32 1.0, %v867_v59 }
0x1556   :  { %v869_v60 = vmul.f32 %v1567_v58, %v868_v15 }
0x1558   :  { %v870_v61 = vadd.f32 %v1567_v58, %v869_v60 }
0x155a   :  { %v874_v0 = vsel %vm873_vm2, %v1567_v58, %v870_v61 }
0x155b   :  { %v879_v3 = vsel %vm876_vm3, %v878_v1, %v874_v0 }
0x155c   :  { %v885_v6 = vmul.f32 %v883_v5, %v879_v3 }
0x15b9   :  { %v888_v2 = vpop.permute.xlu0 %887 }
0x15ba   :  { %v890_v4 = vmul.f32 %v888_v2, %v879_v3 }
0x15bc   :  { %892 = vrot.lane.b32.xlu1 %v890_v4, %s1909_s0 }
0x162e   :  { %v893_v7 = vpop.permute.xlu1 %892 }
0x162f   :  { %v895_v9 = vadd.f32 %v893_v7, %v885_v6 }
0x1631   :  { %1568 = vtanh.f32 %v895_v9  ;;  %v948_v42 = vrot.slane %v895_v9, 6 }
0x1637   :  { %v1569_v10 = vpop.eup %1568 }
0x1638   :  { %898 = vrot.lane.b32.xlu2 %v1569_v10, %s1909_s0 }
0x1692   :  { %v899_v14 = vpop.permute.xlu2 %898 }
0x1693   :  { %v901_v16 = vmul.f32 %v899_v14, %v879_v3 }
0x1695   :  { %v902_v17 = vpack.c.bf16 %v901_v16, %v901_v16 }
0x1697   :  { %v904_v18 = vrot.slane %v902_v17, 1 }
0x1699   :  { %905 = vrot.lane.b32.xlu0 %v904_v18, %s1910_s16 }
0x170b   :  { %v906_v19 = vpop.permute.xlu0 %905 }
0x170c   :  { %1452 = vmatmul.msk.bf16.vlgmr.msrb.gmra.mxu0 %vm237_vm6, %v906_v19  ;;  %v2160_v19 = vadd.f32 %v2130_v25, %v784_v40 }
0x1789   :  { %v919_v21 = vpop.f32.mrf.mxu0 }
0x178a   :  { %v924_v22 = vrot.slane %v919_v21, 4 }
0x178c   :  { %v926_v23 = vadd.f32 %v924_v22, %v2133_v13 }
0x178e   :  { %1570 = vtanh.f32 %v926_v23  ;;  %v1453_v26 = vmul.f32 -1.442695, %v926_v23 }
0x1790   :  { %1572 = vpow2.f32 %v1453_v26 }
0x1791   :  { %v921_v24 = vpop.f32.mrf.mxu0 }
0x1794   :  { %v1571_v12 = vpop.eup %1570 }
0x1795   :  { %952 = vrot.lane.b32.xlu1 %v1571_v12, %s1909_s0 }
0x1796   :  { %v1573_v27 = vpop.eup %1572 }
0x1797   :  { %v930_v28 = vadd.f32 1.0, %v1573_v27 }
0x1799   :  { %1574 = vrcp.f32 %v930_v28  ;;  %v942_v33 = vand.u32 2147483648, %v930_v28  ;;  %vm936_vm7 = vweird.f32 %v930_v28  ;;  %v940_v34 = vand.u32 2147483647, %v930_v28 }
0x179b   :  { %v943_v36 = vor.u32 1.1754944e-38, %v942_v33  ;;  %vm941_vm9 = vcmp.eq.f32.partialorder %v940_v34, 8.507059e+37 }
0x179f   :  { %v1575_v8 = vpop.eup %1574 }
0x17a0   :  { %v932_v29 = vmul.f32 %v1575_v8, %v930_v28  ;;  %vm937_vm4 = vweird.f32 %v1575_v8 }
0x17a1   :  { %vm938_vm8 = vmor %vm936_vm7, %vm937_vm4 }
0x17a2   :  { %v933_v30 = vsub.f32 1.0, %v932_v29 }
0x17a4   :  { %v934_v31 = vmul.f32 %v1575_v8, %v933_v30 }
0x17a6   :  { %v935_v32 = vadd.f32 %v1575_v8, %v934_v31 }
0x17a8   :  { %v939_v35 = vsel %vm938_vm8, %v1575_v8, %v935_v32 }
0x17a9   :  { %v944_v38 = vsel %vm941_vm9, %v943_v36, %v939_v35 }
0x17aa   :  { %v950_v43 = vmul.f32 %v948_v42, %v944_v38 }
0x1807   :  { %v953_v37 = vpop.permute.xlu1 %952 }
0x1808   :  { %v955_v41 = vmul.f32 %v953_v37, %v944_v38 }
0x180a   :  { %957 = vrot.lane.b32.xlu2 %v955_v41, %s1909_s0 }
0x1864   :  { %v958_v44 = vpop.permute.xlu2 %957 }
0x1865   :  { %v960_v45 = vadd.f32 %v958_v44, %v950_v43 }
0x1867   :  { %1576 = vtanh.f32 %v960_v45  ;;  %v1013_v4 = vrot.slane %v960_v45, 6 }
0x186d   :  { %v1577_v46 = vpop.eup %1576 }
0x186e   :  { %963 = vrot.lane.b32.xlu0 %v1577_v46, %s1909_s0 }
0x18e0   :  { %v964_v47 = vpop.permute.xlu0 %963 }
0x18e1   :  { %v966_v48 = vmul.f32 %v964_v47, %v944_v38 }
0x18e3   :  { %v967_v49 = vpack.c.bf16 %v966_v48, %v966_v48 }
0x18e5   :  { %v969_v39 = vrot.slane %v967_v49, 2 }
0x18e7   :  { %970 = vrot.lane.b32.xlu1 %v969_v39, %s1910_s16 }
0x1959   :  { %v971_v50 = vpop.permute.xlu1 %970 }
0x195a   :  { %1454 = vmatmul.msk.bf16.vlgmr.msrb.gmra.mxu1 %vm237_vm6, %v971_v50 }
0x19d7   :  { %v984_v51 = vpop.f32.mrf.mxu1 }
0x19d8   :  { %v989_v52 = vrot.slane %v984_v51, 2 }
0x19da   :  { %v991_v53 = vadd.f32 %v989_v52, %v2133_v13 }
0x19dc   :  { %1578 = vtanh.f32 %v991_v53  ;;  %v1455_v56 = vmul.f32 -1.442695, %v991_v53 }
0x19de   :  { %1580 = vpow2.f32 %v1455_v56 }
0x19df   :  { %v986_v54 = vpop.f32.mrf.mxu1 }
0x19e2   :  { %v1579_v55 = vpop.eup %1578 }
0x19e3   :  { %1017 = vrot.lane.b32.xlu2 %v1579_v55, %s1909_s0 }
0x19e4   :  { %v1581_v57 = vpop.eup %1580 }
0x19e5   :  { %v995_v11 = vadd.f32 1.0, %v1581_v57 }
0x19e7   :  { %1582 = vrcp.f32 %v995_v11  ;;  %v1007_v62 = vand.u32 2147483648, %v995_v11  ;;  %vm1001_vm5 = vweird.f32 %v995_v11  ;;  %v1005_v63 = vand.u32 2147483647, %v995_v11 }
0x19e9   :  { %v1008_v0 = vor.u32 1.1754944e-38, %v1007_v62  ;;  %vm1006_vm12 = vcmp.eq.f32.partialorder %v1005_v63, 8.507059e+37 }
0x19ed   :  { %v1583_v58 = vpop.eup %1582 }
0x19ee   :  { %v997_v59 = vmul.f32 %v1583_v58, %v995_v11  ;;  %vm1002_vm10 = vweird.f32 %v1583_v58 }
0x19ef   :  { %vm1003_vm11 = vmor %vm1001_vm5, %vm1002_vm10 }
0x19f0   :  { %v998_v15 = vsub.f32 1.0, %v997_v59 }
0x19f2   :  { %v999_v60 = vmul.f32 %v1583_v58, %v998_v15 }
0x19f4   :  { %v1000_v61 = vadd.f32 %v1583_v58, %v999_v60 }
0x19f6   :  { %v1004_v13 = vsel %vm1003_vm11, %v1583_v58, %v1000_v61 }
0x19f7   :  { %v1009_v2 = vsel %vm1006_vm12, %v1008_v0, %v1004_v13 }
0x19f8   :  { %v1015_v5 = vmul.f32 %v1013_v4, %v1009_v2 }
0x1a3d   :  { %v1018_v1 = vpop.permute.xlu2 %1017 }
0x1a3e   :  { %v1020_v3 = vmul.f32 %v1018_v1, %v1009_v2 }
0x1a40   :  { %1022 = vrot.lane.b32.xlu0 %v1020_v3, %s1909_s0 }
0x1ab2   :  { %v1023_v6 = vpop.permute.xlu0 %1022 }
0x1ab3   :  { %v1025_v7 = vadd.f32 %v1023_v6, %v1015_v5 }
0x1ab5   :  { %1584 = vtanh.f32 %v1025_v7  ;;  %v1075_v38 = vrot.slane %v1025_v7, 6 }
0x1abb   :  { %v1585_v9 = vpop.eup %1584 }
0x1abc   :  { %1028 = vrot.lane.b32.xlu1 %v1585_v9, %s1909_s0 }
0x1b2e   :  { %v1029_v10 = vpop.permute.xlu1 %1028 }
0x1b2f   :  { %v1031_v14 = vmul.f32 %v1029_v10, %v1009_v2 }
0x1b31   :  { %v1032_v16 = vpack.c.bf16 %v1031_v14, %v1031_v14 }
0x1b33   :  { %v1034_v17 = vrot.slane %v1032_v16, 3 }
0x1b35   :  { %1035 = vrot.lane.b32.xlu2 %v1034_v17, %s1910_s16 }
0x1b8f   :  { %v1036_v18 = vpop.permute.xlu2 %1035 }
0x1b90   :  { %1456 = vmatmul.msk.bf16.vlgmr.msrb.gmra.mxu2 %vm237_vm6, %v1036_v18 }
0x1c13   :  { %v1049_v21 = vpop.f32.mrf.mxu2 }
0x1c14   :  { %v1053_v22 = vadd.f32 %v1049_v21, %v2160_v19 }
0x1c16   :  { %1586 = vtanh.f32 %v1053_v22  ;;  %v1457_v12 = vmul.f32 -1.442695, %v1053_v22 }
0x1c18   :  { %1588 = vpow2.f32 %v1457_v12 }
0x1c1b   :  { %v1051_v23 = vpop.f32.mrf.mxu2 }
0x1c1c   :  { %v1587_v24 = vpop.eup %1586 }
0x1c1d   :  { %1079 = vrot.lane.b32.xlu0 %v1587_v24, %s1909_s0 }
0x1c1e   :  { %v1589_v26 = vpop.eup %1588 }
0x1c1f   :  { %v1057_v27 = vadd.f32 1.0, %v1589_v26 }
0x1c21   :  { %1590 = vrcp.f32 %v1057_v27  ;;  %v1069_v25 = vand.u32 2147483648, %v1057_v27  ;;  %vm1063_vm14 = vweird.f32 %v1057_v27  ;;  %v1067_v32 = vand.u32 2147483647, %v1057_v27 }
0x1c23   :  { %v1070_v34 = vor.u32 1.1754944e-38, %v1069_v25  ;;  %vm1068_vm2 = vcmp.eq.f32.partialorder %v1067_v32, 8.507059e+37 }
0x1c27   :  { %v1591_v28 = vpop.eup %1590 }
0x1c28   :  { %v1059_v8 = vmul.f32 %v1591_v28, %v1057_v27  ;;  %vm1064_vm13 = vweird.f32 %v1591_v28 }
0x1c29   :  { %vm1065_vm1 = vmor %vm1063_vm14, %vm1064_vm13 }
0x1c2a   :  { %v1060_v29 = vsub.f32 1.0, %v1059_v8 }
0x1c2c   :  { %v1061_v30 = vmul.f32 %v1591_v28, %v1060_v29 }
0x1c2e   :  { %v1062_v31 = vadd.f32 %v1591_v28, %v1061_v30 }
0x1c30   :  { %v1066_v33 = vsel %vm1065_vm1, %v1591_v28, %v1062_v31 }
0x1c31   :  { %v1071_v36 = vsel %vm1068_vm2, %v1070_v34, %v1066_v33 }
0x1c32   :  { %v1077_v41 = vmul.f32 %v1075_v38, %v1071_v36 }
0x1c8f   :  { %v1080_v35 = vpop.permute.xlu0 %1079 }
0x1c90   :  { %v1082_v37 = vmul.f32 %v1080_v35, %v1071_v36 }
0x1c92   :  { %1084 = vrot.lane.b32.xlu1 %v1082_v37, %s1909_s0 }
0x1d04   :  { %v1085_v42 = vpop.permute.xlu1 %1084 }
0x1d05   :  { %v1087_v43 = vadd.f32 %v1085_v42, %v1077_v41 }
0x1d07   :  { %1592 = vtanh.f32 %v1087_v43  ;;  %v1139_v0 = vrot.slane %v1087_v43, 6 }
0x1d0d   :  { %v1593_v44 = vpop.eup %1592 }
0x1d0e   :  { %1090 = vrot.lane.b32.xlu2 %v1593_v44, %s1909_s0 }
0x1d68   :  { %v1091_v45 = vpop.permute.xlu2 %1090 }
0x1d69   :  { %v1093_v46 = vmul.f32 %v1091_v45, %v1071_v36 }
0x1d6b   :  { %v1094_v47 = vpack.c.bf16 %v1093_v46, %v1093_v46 }
0x1d6d   :  { %1096 = vrot.lane.b32.xlu0 %v1094_v47, %s1910_s16 }
0x1ddf   :  { %v1097_v48 = vpop.permute.xlu0 %1096 }
0x1de0   :  { %1458 = vmatmul.msk.bf16.vlgmr.msrb.gmra.mxu3 %vm237_vm6, %v1097_v48 }
0x1e63   :  { %v1110_v49 = vpop.f32.mrf.mxu3 }
0x1e64   :  { %v1115_v39 = vrot.slane %v1110_v49, 6 }
0x1e66   :  { %v1117_v50 = vadd.f32 %v1115_v39, %v2160_v19 }
0x1e68   :  { %1594 = vtanh.f32 %v1117_v50  ;;  %v1459_v52 = vmul.f32 -1.442695, %v1117_v50 }
0x1e6a   :  { %1596 = vpow2.f32 %v1459_v52 }
0x1e6b   :  { %v1112_v40 = vpop.f32.mrf.mxu3 }
0x1e6e   :  { %v1595_v51 = vpop.eup %1594 }
0x1e6f   :  { %1143 = vrot.lane.b32.xlu1 %v1595_v51, %s1909_s0 }
0x1e70   :  { %v1597_v53 = vpop.eup %1596 }
0x1e71   :  { %v1121_v54 = vadd.f32 1.0, %v1597_v53 }
0x1e73   :  { %1598 = vrcp.f32 %v1121_v54  ;;  %v1133_v59 = vand.u32 2147483648, %v1121_v54  ;;  %vm1127_vm4 = vweird.f32 %v1121_v54  ;;  %v1131_v15 = vand.u32 2147483647, %v1121_v54 }
0x1e75   :  { %v1134_v61 = vor.u32 1.1754944e-38, %v1133_v59  ;;  %vm1132_vm8 = vcmp.eq.f32.partialorder %v1131_v15, 8.507059e+37 }
0x1e79   :  { %v1599_v55 = vpop.eup %1598 }
0x1e7a   :  { %v1123_v56 = vmul.f32 %v1599_v55, %v1121_v54  ;;  %vm1128_vm3 = vweird.f32 %v1599_v55 }
0x1e7b   :  { %vm1129_vm7 = vmor %vm1127_vm4, %vm1128_vm3 }
0x1e7c   :  { %v1124_v57 = vsub.f32 1.0, %v1123_v56 }
0x1e7e   :  { %v1125_v11 = vmul.f32 %v1599_v55, %v1124_v57 }
0x1e80   :  { %v1126_v58 = vadd.f32 %v1599_v55, %v1125_v11 }
0x1e82   :  { %v1130_v60 = vsel %vm1129_vm7, %v1599_v55, %v1126_v58 }
0x1e83   :  { %v1135_v63 = vsel %vm1132_vm8, %v1134_v61, %v1130_v60 }
0x1e84   :  { %v1141_v1 = vmul.f32 %v1139_v0, %v1135_v63 }
0x1ee1   :  { %v1144_v62 = vpop.permute.xlu1 %1143 }
0x1ee2   :  { %v1146_v13 = vmul.f32 %v1144_v62, %v1135_v63 }
0x1ee4   :  { %1148 = vrot.lane.b32.xlu2 %v1146_v13, %s1909_s0 }
0x1f3e   :  { %v1149_v2 = vpop.permute.xlu2 %1148 }
0x1f3f   :  { %v1151_v3 = vadd.f32 %v1149_v2, %v1141_v1  ;;  %v1290_v2 = vld [vmem:[#allocation13 + $0x10] sm:$0xff] }
0x1f41   :  { %1600 = vtanh.f32 %v1151_v3  ;;  %v1204_v35 = vrot.slane %v1151_v3, 6  ;;  %v1291_v3 = vld [vmem:[#allocation13 + $0x18] sm:$0xff] }
0x1f47   :  { %v1601_v4 = vpop.eup %1600 }
0x1f48   :  { %1154 = vrot.lane.b32.xlu0 %v1601_v4, %s1909_s0  ;;  %v1288_v4 = vld [vmem:[#allocation13] sm:$0xff] }
0x1fba   :  { %v1155_v5 = vpop.permute.xlu0 %1154 }
0x1fbb   :  { %v1157_v6 = vmul.f32 %v1155_v5, %v1135_v63  ;;  %v1293_v5 = vpack.c.bf16 %v1291_v3, %v1290_v2 }
0x1fbd   :  { %v1158_v7 = vpack.c.bf16 %v1157_v6, %v1157_v6  ;;  %v1289_v6 = vld [vmem:[#allocation13 + $0x8] sm:$0xff]  ;;  %1341 = vmatpush.bf16.msra.mxu2 %v1293_v5 }
0x1fbf   :  { %v1160_v9 = vrot.slane %v1158_v7, 1  ;;  %v1292_v7 = vpack.c.bf16 %v1289_v6, %v1288_v4 }
0x1fc1   :  { %1161 = vrot.lane.b32.xlu1 %v1160_v9, %s1910_s16  ;;  %1342 = vmatpush.bf16.msra.mxu2 %v1292_v7 }
0x2033   :  { %v1162_v10 = vpop.permute.xlu1 %1161 }
0x2034   :  { %1460 = vmatmul.msk.bf16.vlgmr.msra.gmra.mxu0 %vm237_vm6, %v1162_v10 }
0x20b1   :  { %v1175_v14 = vpop.f32.mrf.mxu0 }
0x20b2   :  { %v1180_v16 = vrot.slane %v1175_v14, 4  ;;  %v1317_v14 = vrot.slane %v2122_v20, 6  ;;  %v1295_v20 = vld [vmem:[%s2225_s9] sm:$0xff] }
0x20b4   :  { %v1182_v17 = vadd.f32 %v1180_v16, %v2160_v19 }
0x20b6   :  { %1602 = vtanh.f32 %v1182_v17  ;;  %v1461_v22 = vmul.f32 -1.442695, %v1182_v17 }
0x20b8   :  { %1604 = vpow2.f32 %v1461_v22 }
0x20b9   :  { %v1177_v18 = vpop.f32.mrf.mxu0 }
0x20bc   :  { %v1603_v21 = vpop.eup %1602 }
0x20bd   :  { %1208 = vrot.lane.b32.xlu2 %v1603_v21, %s1909_s0 }
0x20be   :  { %v1605_v23 = vpop.eup %1604 }
0x20bf   :  { %v1186_v24 = vadd.f32 1.0, %v1605_v23  ;;  %v1297_v23 = vld [vmem:[%s2225_s9 + $0x10] sm:$0xff] }
0x20c1   :  { %1606 = vrcp.f32 %v1186_v24  ;;  %v1198_v29 = vand.u32 2147483648, %v1186_v24  ;;  %vm1192_vm10 = vweird.f32 %v1186_v24  ;;  %v1196_v30 = vand.u32 2147483647, %v1186_v24 }
0x20c3   :  { %v1199_v25 = vor.u32 1.1754944e-38, %v1198_v29  ;;  %vm1197_vm11 = vcmp.eq.f32.partialorder %v1196_v30, 8.507059e+37  ;;  %v1305_v29 = vld [vmem:[#allocation16 + $0x18] sm:$0xff]  ;;  %v1302_v30 = vld [vmem:[#allocation16] sm:$0xff] }
0x20c7   :  { %v1607_v12 = vpop.eup %1606 }
0x20c8   :  { %v1188_v26 = vmul.f32 %v1607_v12, %v1186_v24  ;;  %vm1193_vm9 = vweird.f32 %v1607_v12  ;;  %v1298_v24 = vld [vmem:[%s2225_s9 + $0x18] sm:$0xff] }
0x20c9   :  { %vm1194_vm5 = vmor %vm1192_vm10, %vm1193_vm9 }
0x20ca   :  { %v1189_v27 = vsub.f32 1.0, %v1188_v26  ;;  %v1296_v26 = vld [vmem:[%s2225_s9 + $0x8] sm:$0xff] }
0x20cc   :  { %v1190_v28 = vmul.f32 %v1607_v12, %v1189_v27  ;;  %v1299_v27 = vpack.c.bf16 %v1296_v26, %v1295_v20 }
0x20ce   :  { %v1191_v8 = vadd.f32 %v1607_v12, %v1190_v28 }
0x20d0   :  { %v1195_v31 = vsel %vm1194_vm5, %v1607_v12, %v1191_v8  ;;  %v1300_v12 = vpack.c.bf16 %v1298_v24, %v1297_v23  ;;  %v1304_v8 = vld [vmem:[#allocation16 + $0x10] sm:$0xff] }
0x20d1   :  { %v1200_v33 = vsel %vm1197_vm11, %v1199_v25, %v1195_v31  ;;  %v1307_v31 = vpack.c.bf16 %v1305_v29, %v1304_v8  ;;  %v1303_v25 = vld [vmem:[#allocation16 + $0x8] sm:$0xff] }
0x20d2   :  { %v1206_v36 = vmul.f32 %v1204_v35, %v1200_v33  ;;  %1361 = vmatpush.bf16.msra.mxu3 %v1300_v12 }
0x20d3   :  { %1381 = vmatpush.bf16.msrb.mxu0 %v1307_v31 }
0x20d6   :  { %1362 = vmatpush.bf16.msra.mxu3 %v1299_v27 }
0x2117   :  { %v1209_v32 = vpop.permute.xlu2 %1208 }
0x2118   :  { %v1211_v34 = vmul.f32 %v1209_v32, %v1200_v33  ;;  %v1306_v32 = vpack.c.bf16 %v1303_v25, %v1302_v30 }
0x211a   :  { %1213 = vrot.lane.b32.xlu0 %v1211_v34, %s1909_s0  ;;  %1382 = vmatpush.bf16.msrb.mxu0 %v1306_v32 }
0x218c   :  { %v1214_v37 = vpop.permute.xlu0 %1213 }
0x218d   :  { %v1216_v38 = vadd.f32 %v1214_v37, %v1206_v36 }
0x218f   :  { %1608 = vtanh.f32 %v1216_v38  ;;  %v1269_v62 = vrot.slane %v1216_v38, 6  ;;  %v1311_v38 = vld [vmem:[#allocation17 + $0x10] sm:$0xff] }
0x2195   :  { %v1609_v41 = vpop.eup %1608 }
0x2196   :  { %1219 = vrot.lane.b32.xlu1 %v1609_v41, %s1909_s0  ;;  %v1312_v41 = vld [vmem:[#allocation17 + $0x18] sm:$0xff] }
0x2208   :  { %v1220_v42 = vpop.permute.xlu1 %1219 }
0x2209   :  { %v1222_v43 = vmul.f32 %v1220_v42, %v1200_v33  ;;  %v1486_v33 = vld [vmem:[#allocation14] ss:$0 sm:$0xff]  ;;  %v1309_v42 = vld [vmem:[#allocation17] sm:$0xff] }
0x220b   :  { %v1223_v44 = vpack.c.bf16 %v1222_v43, %v1222_v43  ;;  %v1314_v43 = vpack.c.bf16 %v1312_v41, %v1311_v38 }
0x220d   :  { %v1225_v45 = vrot.slane %v1223_v44, 2  ;;  %v1310_v44 = vld [vmem:[#allocation17 + $0x8] sm:$0xff]  ;;  %1402 = vmatpush.bf16.msrb.mxu1 %v1314_v43 }
0x220f   :  { %1226 = vrot.lane.b32.xlu2 %v1225_v45, %s1910_s16  ;;  %v1313_v45 = vpack.c.bf16 %v1310_v44, %v1309_v42 }
0x2211   :  { %1403 = vmatpush.bf16.msrb.mxu1 %v1313_v45 }
0x2269   :  { %v1227_v46 = vpop.permute.xlu2 %1226 }
0x226a   :  { %1462 = vmatmul.msk.bf16.vlgmr.msra.gmra.mxu1 %vm237_vm6, %v1227_v46  ;;  %v1487_v46 = vld [vmem:[%s2226_s10] ss:$0 sm:$0xff]  ;;  %s1911_s10 = smov [#allocation19]  }
0x226b   :  { %s1415_s7 = sshll.u32 %s1911_s10, 4  ;;  %s1416_s7 = int_to_ptr.vmem [resolvable:$true] %s1415_s7 }
0x22e7   :  { %v1240_v47 = vpop.f32.mrf.mxu1 }
0x22e8   :  { %v1245_v48 = vrot.slane %v1240_v47, 2 }
0x22ea   :  { %v1247_v49 = vadd.f32 %v1245_v48, %v2160_v19 }
0x22ec   :  { %1610 = vtanh.f32 %v1247_v49  ;;  %v1463_v40 = vmul.f32 -1.442695, %v1247_v49 }
0x22ee   :  { %1612 = vpow2.f32 %v1463_v40 }
0x22ef   :  { %v1242_v39 = vpop.f32.mrf.mxu1 }
0x22f2   :  { %v1611_v50 = vpop.eup %1610 }
0x22f3   :  { %1273 = vrot.lane.b32.xlu0 %v1611_v50, %s1909_s0  ;;  %v1488_v50 = vld [vmem:[%s2228_s12] ss:$0 sm:$0xff] }
0x22f4   :  { %v1613_v51 = vpop.eup %1612 }
0x22f5   :  { %v1251_v52 = vadd.f32 1.0, %v1613_v51 }
0x22f7   :  { %1614 = vrcp.f32 %v1251_v52  ;;  %v1263_v11 = vand.u32 2147483648, %v1251_v52  ;;  %vm1257_vm13 = vweird.f32 %v1251_v52  ;;  %v1261_v58 = vand.u32 2147483647, %v1251_v52 }
0x22f9   :  { %v1264_v59 = vor.u32 1.1754944e-38, %v1263_v11  ;;  %vm1262_vm1 = vcmp.eq.f32.partialorder %v1261_v58, 8.507059e+37 }
0x22fd   :  { %v1615_v53 = vpop.eup %1614 }
0x22fe   :  { %v1253_v54 = vmul.f32 %v1615_v53, %v1251_v52  ;;  %vm1258_vm12 = vweird.f32 %v1615_v53 }
0x22ff   :  { %vm1259_vm14 = vmor %vm1257_vm13, %vm1258_vm12 }
0x2300   :  { %v1254_v55 = vsub.f32 1.0, %v1253_v54 }
0x2302   :  { %v1255_v56 = vmul.f32 %v1615_v53, %v1254_v55  ;;  %v1489_v55 = vld [vmem:[%s2230_s14] ss:$0 sm:$0xff] }
0x2304   :  { %v1256_v57 = vadd.f32 %v1615_v53, %v1255_v56 }
0x2306   :  { %v1260_v19 = vsel %vm1259_vm14, %v1615_v53, %v1256_v57 }
0x2307   :  { %v1265_v60 = vsel %vm1262_vm1, %v1264_v59, %v1260_v19 }
0x2308   :  { %v1271_v63 = vmul.f32 %v1269_v62, %v1265_v60 }
0x2365   :  { %v1274_v15 = vpop.permute.xlu0 %1273 }
0x2366   :  { %v1276_v61 = vmul.f32 %v1274_v15, %v1265_v60 }
0x2368   :  { %1278 = vrot.lane.b32.xlu1 %v1276_v61, %s1909_s0 }
0x23da   :  { %v1279_v13 = vpop.permute.xlu1 %1278 }
0x23db   :  { %v1281_v0 = vadd.f32 %v1279_v13, %v1271_v63 }
0x23dd   :  { %1616 = vtanh.f32 %v1281_v0 }
0x23e3   :  { %v1617_v1 = vpop.eup %1616 }
0x23e4   :  { %1284 = vrot.lane.b32.xlu2 %v1617_v1, %s1909_s0 }
0x243e   :  { %v1285_v9 = vpop.permute.xlu2 %1284 }
0x243f   :  { %v1287_v10 = vmul.f32 %v1285_v9, %v1265_v60 }
0x2441   :  { %v1320_v16 = vrot.slane %v1287_v10, 4 }
0x2443   :  { %v1322_v17 = vsel %vm742_vm15, %v1317_v14, %v1320_v16 }
0x2444   :  { %v1323_v18 = vsel %vm219_vm0, %v1322_v17, 0.0 }
0x2445   :  { %v1324_v21 = vmax.f32 %v1323_v18, 0.0 }
0x2447   :  { %v1325_v22 = vpack.c.bf16 %v1324_v21, %v1324_v21 }
0x2449   :  { %1330 = vrot.lane.b32.xlu0 %v1325_v22, %s1910_s16 }
0x24bb   :  { %v1331_v28 = vpop.permute.xlu0 %1330 }
0x24bc   :  { %1464 = vmatmul.msk.bf16.vlgmr.msra.gmra.mxu2 %vm237_vm6, %v1331_v28 }
0x253f   :  { %v1344_v34 = vpop.f32.mrf.mxu2 }
0x2540   :  { %v1345_v35 = vadd.f32 %v1486_v33, %v1344_v34 }
0x2542   :  { %v1348_v36 = vpack.c.bf16 %v1345_v35, %v1345_v35 }
0x2544   :  { %1465 = vmatmul.msk.bf16.vlgmr.msra.gmra.mxu3 %vm237_vm6, %v1348_v36 }
0x2547   :  { %v1346_v37 = vpop.f32.mrf.mxu2 }
0x25c7   :  { %v1364_v47 = vpop.f32.mrf.mxu3 }
0x25c8   :  { %v1365_v48 = vadd.f32 %v1487_v46, %v1364_v47 }
0x25ca   :  { %v1368_v49 = vpack.c.bf16 %v1365_v48, %v1365_v48 }
0x25cc   :  { %1466 = vmatmul.msk.bf16.vlgmr.msrb.gmra.mxu0 %vm237_vm6, %v1368_v49 }
0x25cf   :  { %v1366_v39 = vpop.f32.mrf.mxu3 }
0x2649   :  { %v1384_v40 = vpop.f32.mrf.mxu0 }
0x264a   :  { %v1385_v51 = vadd.f32 %v1488_v50, %v1384_v40 }
0x264c   :  { %v1388_v52 = vmax.f32 %v1385_v51, 0.0 }
0x264e   :  { %v1389_v53 = vpack.c.bf16 %v1388_v52, %v1388_v52 }
0x2650   :  { %1467 = vmatmul.msk.bf16.vlgmr.msrb.gmra.mxu1 %vm237_vm6, %v1389_v53 }
0x2651   :  { %v1386_v54 = vpop.f32.mrf.mxu0 }
0x26cd   :  { %v1405_v56 = vpop.f32.mrf.mxu1 }
0x26ce   :  { %v1406_v57 = vadd.f32 %v1489_v55, %v1405_v56 }
0x26d0   :  { %1409 = vst [vmem:[#allocation19] sm:$0xff] %v1406_v57 }
0x26d1   :  { %1420 = dma.vmem_to_hbm [thread:$0]  %s1416_s7, 128, %s1418_s29, [#allocation4]  }
0x26d5   :  { %v1407_v11 = vpop.f32.mrf.mxu1 }
0x26d6   :  { %1894 = dma.done.wait [#allocation4], 128  }
0x26d7   :  { %1895 = vsyncadd [#allocation4], 4294967168 }
0x26d8   :  { %1425 = vsyncpa [#allocation3], 1 }
0x26d9   :  { %1426 = vsyncpa [#allocation6], 1 }
0x26da   :  { %1427 = vsyncpa [#allocation9], 1 }
0x26db   :  { %1428 = vsyncpa [#allocation12], 1 }
0x26dc   :  { %1429 = vsyncpa [#allocation15], 1 }
0x26dd   :  { %1430 = vsyncpa [#allocation18], 1 }
0x26de   :  { %1431 = vsyncpa [#allocation4], 1 }

</bundles_post_ra>
